<compile_context>
chip_gen: v7x
topology: tpu7x:2x2x1
jax: 0.10.0
libtpu: 0.0.40
codegen_flags: <defaults>
</compile_context>

<pallas_src>
import functools
import numpy as np

import jax
import jax.numpy as jnp
from jax import lax
from jax.experimental import pallas as pl
from jax.experimental.pallas import tpu as pltpu


def _round_up(x, m):
    return ((x + m - 1) // m) * m


# --------------------------- fused SSTv2 kernel -------------------------------
def _make_sst_kernel(*, n_conv, d0, couts, dil, Wp, head_len, HW_COMP, L,
                     L_TILE, n_sc_tiles, CHUNK, CR):
    """recover_bev (chunked one-hot MXU scatter) + attached conv/BN/ReLU stack.

    One batch element per grid step, channel-major layout.
      d0       : channels of the scattered canvas (d_model[-1])
      Wp       : padded BEV width
      head_len : pad*Wp + pad  (flat offset of the canvas interior)
      HW_COMP  : extended-width compute length, multiple of 128
      L        : flat padded canvas length (>= all tap windows), multiple of 128
    """
    KH = KW = 3

    def kernel(bounds_ref, vt_ref, tgt_ref, mask_ref, *rest):
        conv_refs = rest[:3 * n_conv]
        out_ref = rest[3 * n_conv]
        pad_ref = rest[3 * n_conv + 1]      # [CR, L]        bf16 padded canvas
        acc_ref = rest[3 * n_conv + 2]      # [max cout, HW] f32 conv accumulator

        b = pl.program_id(0)

        # ---- per-step canvas init: scatter background for rows [0, d0) and
        # head/tail halo zero for any extra conv rows.  The interior of those
        # rows is always written (masked) by the previous conv layer before it
        # is read, so no full re-zero between layers is needed.
        pad_ref[pl.ds(0, d0), :] = jnp.zeros((d0, L), pad_ref.dtype)
        if CR > d0:
            pad_ref[pl.ds(d0, CR - d0), pl.ds(0, head_len)] = jnp.zeros(
                (CR - d0, head_len), pad_ref.dtype)
            tail_len = L - head_len - HW_COMP
            if tail_len > 0:
                pad_ref[pl.ds(d0, CR - d0),
                        pl.ds(head_len + HW_COMP, tail_len)] = jnp.zeros(
                            (CR - d0, tail_len), pad_ref.dtype)

        # ---- recover_bev: chunked one-hot matmul scatter on the MXU, only over
        # this batch's (scalar-prefetched) voxel chunk range.  Duplicate voxel
        # coordinates would SUM (voxelizer guarantees uniqueness).
        lo = bounds_ref[b, 0]
        hi = bounds_ref[b, 1]

        def chunk_body(ci, carry):
            base = pl.multiple_of(ci * CHUNK, CHUNK)
            vtc = vt_ref[:, pl.ds(base, CHUNK)]                  # [d0, CHUNK] bf16
            tgt_row = tgt_ref[:, pl.ds(base, CHUNK)]             # [1, CHUNK]  int32
            # lane -> sublane conversion of the 128 targets via diagonal select
            # + lane reduction (avoids a (1,C)->(C,1) reshape/relayout).
            rr = lax.broadcasted_iota(jnp.int32, (CHUNK, CHUNK), 0)
            cc = lax.broadcasted_iota(jnp.int32, (CHUNK, CHUNK), 1)
            tgt_col = jnp.sum(
                jnp.where(rr == cc,
                          jnp.broadcast_to(tgt_row, (CHUNK, CHUNK)), 0),
                axis=1, keepdims=True)                           # [CHUNK, 1] int32
            for lt in range(n_sc_tiles):
                col0 = lt * L_TILE
                pos = lax.broadcasted_iota(jnp.int32, (CHUNK, L_TILE), 1) + col0
                oh = (pos == tgt_col).astype(jnp.bfloat16)       # [CHUNK, L_TILE]
                contrib = jnp.dot(vtc, oh, preferred_element_type=jnp.float32)
                cur = pad_ref[pl.ds(0, d0), pl.ds(col0, L_TILE)]
                pad_ref[pl.ds(0, d0), pl.ds(col0, L_TILE)] = \
                    cur + contrib.astype(pad_ref.dtype)
            return carry

        lax.fori_loop(lo, hi, chunk_body, 0)

        mask = mask_ref[...]                                     # [1, HW_COMP] f32

        # ---- attached conv + folded BN(eval) + ReLU layers -----------------
        cin = d0
        for li in range(n_conv):
            w_ref, s_ref, bb_ref = conv_refs[3 * li:3 * li + 3]
            cout = couts[li]

            # 9 per-tap accumulating matmuls over contiguous extended-width
            # windows of the flat padded canvas (no im2col staging buffer).
            for t in range(KH * KW):
                ky, kx = divmod(t, KW)
                off = ky * dil * Wp + kx * dil
                contrib = jnp.dot(
                    w_ref[t],                                    # [cout, cin] bf16
                    pad_ref[pl.ds(0, cin), pl.ds(off, HW_COMP)], # [cin, HW_COMP]
                    preferred_element_type=jnp.float32)
                if t == 0:
                    acc_ref[pl.ds(0, cout), :] = contrib
                else:
                    acc_ref[pl.ds(0, cout), :] = \
                        acc_ref[pl.ds(0, cout), :] + contrib

            # folded BN(eval) + ReLU epilogue in f32
            y = jnp.maximum(acc_ref[pl.ds(0, cout), :] * s_ref[...] + bb_ref[...],
                            0.0)

            if li + 1 < n_conv:
                # masked interior re-pad for the next layer (halo stays zero)
                pad_ref[pl.ds(0, cout), pl.ds(head_len, HW_COMP)] = \
                    (y * mask).astype(pad_ref.dtype)
                cin = cout
            else:
                # last layer: no mask — garbage columns are dropped by the
                # wrapper's reshape/slice; store is lane-dense (HW_COMP % 128 == 0)
                out_ref[...] = y.astype(out_ref.dtype)

    return kernel


# ------------------------------ SSTv2 forward ---------------------------------
def sstv2_forward(voxel_info, lin_w, lin_b, conv_params, *, batch_size, ny, nx,
                  conv_dilation, conv_padding):
    coors = voxel_info['voxel_coors'].astype(jnp.int32)   # [N, 4] (b, z, y, x)
    feats = voxel_info['voxel_feats'].astype(jnp.float32) # [N, in_channel]
    n_conv = len(conv_params)
    assert n_conv >= 1

    N, cin0 = feats.shape
    D = lin_w.shape[1]
    pad, dil = conv_padding, conv_dilation
    Wp, Hp = nx + 2 * pad, ny + 2 * pad

    CHUNK = 128                                  # voxel chunk (MXU K per scatter step)
    L_TILE = 512                                 # scatter lane tile
    HW_COMP = _round_up(ny * Wp, 128)            # extended-width compute length
    head_len = pad * Wp + pad
    max_off = 2 * dil * Wp + 2 * dil
    n_sc_tiles = (Hp * Wp + L_TILE - 1) // L_TILE
    L = _round_up(max(Hp * Wp, max_off + HW_COMP, head_len + HW_COMP,
                      n_sc_tiles * L_TILE), 128)

    # ---- per-batch voxel layout: sort by batch id, pad to a CHUNK multiple,
    # precompute lane-dense flat scatter targets + per-batch chunk ranges.
    order = jnp.argsort(coors[:, 0])
    coors_s = coors[order]
    feats_s = feats[order]
    Npad = _round_up(N, CHUNK)
    feats_p = jnp.zeros((Npad, cin0), jnp.float32).at[:N].set(feats_s)
    flat = (coors_s[:, 2] + pad) * Wp + (coors_s[:, 3] + pad)
    flat_p = jnp.full((Npad,), -1, jnp.int32).at[:N].set(flat.astype(jnp.int32))
    bid_p = jnp.full((Npad,), -1, jnp.int32).at[:N].set(coors_s[:, 0])

    bgrid = jnp.arange(batch_size, dtype=jnp.int32)[:, None]
    is_b = bid_p[None, :] == bgrid                                   # [B, Npad]
    tgt_all = jnp.where(is_b, flat_p[None, :], -1).astype(jnp.int32)[:, None, :]
    counts = jnp.sum(is_b, axis=1).astype(jnp.int32)
    starts = (jnp.cumsum(counts) - counts).astype(jnp.int32)
    lo = starts // CHUNK
    hi = (starts + counts + CHUNK - 1) // CHUNK
    bounds = jnp.stack([lo, hi], axis=1).astype(jnp.int32)           # [B, 2]

    # ---- linear0 hoisted out of the per-batch grid loop (batch-invariant).
    # TODO(synk): BasicShiftBlockV2 transformer blocks are not part of the
    # provided module source; identity pass-through between linear0 and
    # recover_bev.
    vt = (feats_p @ lin_w + lin_b[None, :]).T.astype(jnp.bfloat16)   # [D, Npad]

    q = jnp.arange(HW_COMP, dtype=jnp.int32)
    mask = ((q % Wp < nx) & (q < ny * Wp)).astype(jnp.float32)[None, :]

    # conv weights -> per-tap [9, cout, cin] bf16; BN folded (eval) scale/bias
    conv_inputs = []
    couts = []
    cin = D
    for (w, scale, bias) in conv_params:                 # w HWIO [3, 3, cin, cout]
        kh, kw, wcin, cout = w.shape
        assert (kh, kw) == (3, 3) and wcin == cin
        w_taps = jnp.transpose(w.reshape(kh * kw, cin, cout), (0, 2, 1))
        conv_inputs += [w_taps.astype(jnp.bfloat16),
                        scale.reshape(cout, 1).astype(jnp.float32),
                        bias.reshape(cout, 1).astype(jnp.float32)]
        couts.append(cout)
        cin = cout
    cout_last = couts[-1]
    CR = max([D] + couts[:-1])                 # canvas rows (layer-input channels)
    CO = max(couts)                            # accumulator rows

    in_arrays = [vt, tgt_all, mask] + conv_inputs
    in_specs = [
        pl.BlockSpec((D, Npad), lambda b, s: (0, 0)),
        pl.BlockSpec((None, 1, Npad), lambda b, s: (b, 0, 0)),
        pl.BlockSpec((1, HW_COMP), lambda b, s: (0, 0)),
    ]
    for li in range(n_conv):
        wt, sc, bi = conv_inputs[3 * li:3 * li + 3]
        in_specs += [pl.BlockSpec(wt.shape, lambda b, s: (0, 0, 0)),
                     pl.BlockSpec(sc.shape, lambda b, s: (0, 0)),
                     pl.BlockSpec(bi.shape, lambda b, s: (0, 0))]

    kernel = _make_sst_kernel(n_conv=n_conv, d0=D, couts=tuple(couts), dil=dil,
                              Wp=Wp, head_len=head_len, HW_COMP=HW_COMP, L=L,
                              L_TILE=L_TILE, n_sc_tiles=n_sc_tiles,
                              CHUNK=CHUNK, CR=CR)

    scratch_shapes = [pltpu.VMEM((CR, L), jnp.bfloat16),
                      pltpu.VMEM((CO, HW_COMP), jnp.float32)]

    # explicit scoped-VMEM budget: resident inputs (double-buffered), per-batch
    # output block, canvas + accumulator scratch, plus generous headroom.
    in_bytes = sum(int(np.prod(a.shape)) * a.dtype.itemsize for a in in_arrays)
    out_bytes = cout_last * HW_COMP * 4
    scratch_bytes = CR * L * 2 + CO * HW_COMP * 4
    vmem_limit = int(min(2 * (2 * in_bytes + 2 * out_bytes + scratch_bytes)
                         + (8 << 20), 96 << 20))

    grid_spec = pltpu.PrefetchScalarGridSpec(
        num_scalar_prefetch=1,
        grid=(batch_size,),
        in_specs=in_specs,
        out_specs=pl.BlockSpec((None, cout_last, HW_COMP),
                               lambda b, s: (b, 0, 0)),
        scratch_shapes=scratch_shapes)

    out_flat = pl.pallas_call(
        kernel,
        out_shape=jax.ShapeDtypeStruct((batch_size, cout_last, HW_COMP),
                                       jnp.float32),
        grid_spec=grid_spec,
        compiler_params=pltpu.CompilerParams(
            dimension_semantics=("parallel",),
            vmem_limit_bytes=vmem_limit),
    )(bounds, *in_arrays)

    # drop the padded-width garbage columns -> NCHW (channel-major already)
    out = out_flat[:, :, :ny * Wp].reshape(batch_size, cout_last, ny, Wp)
    return [out[:, :, :, :nx]]


# ------------------------- pure-JAX f32 reference -----------------------------
def _reference_forward(voxel_info, lin_w, lin_b, conv_params, *, batch_size,
                       ny, nx, dil, pad):
    coors = voxel_info['voxel_coors']
    feats = voxel_info['voxel_feats']
    v = feats @ lin_w + lin_b                                   # [N, D]
    D = v.shape[-1]
    canvas = jnp.zeros((batch_size, ny, nx, D), jnp.float32)
    canvas = canvas.at[coors[:, 0], coors[:, 2], coors[:, 3]].set(v)
    x = canvas
    for (w, scale, bias) in conv_params:
        y = lax.conv_general_dilated(
            x, w, window_strides=(1, 1),
            padding=((pad, pad), (pad, pad)),
            rhs_dilation=(dil, dil),
            dimension_numbers=('NHWC', 'HWIO', 'NHWC'))
        x = jnp.maximum(y * scale + bias, 0.0)
    return jnp.transpose(x, (0, 3, 1, 2))


# ----------------------------------- main -------------------------------------
if __name__ == "__main__":
    key = jax.random.PRNGKey(0)
    keys = jax.random.split(key, 12)

    # small config consistent with the module's __init__
    in_channel = 16
    num_blocks = 2
    d_model = [32] * num_blocks
    nhead = [4] * num_blocks             # unused: blocks are identity (TODO above)
    dim_feedforward = [64] * num_blocks  # unused
    ny, nx = 16, 16                      # output_shape
    num_attached_conv = 2
    conv_in_channel = d_model[-1]
    conv_out_channel = 32
    conv_dilation, conv_padding = 2, 2   # kernel_size=3, stride=1
    bn_eps = 1e-3
    N_voxels = 64
    batch = 2                            # static batch size (no device sync)

    # deterministic parameter init (synthetic, no checkpoint)
    lin_w = jax.random.normal(keys[0], (in_channel, d_model[0]), jnp.float32) \
        * (1.0 / np.sqrt(in_channel))
    lin_b = jnp.zeros((d_model[0],), jnp.float32)

    conv_params = []
    cin = conv_in_channel
    for i in range(num_attached_conv):
        w = jax.random.normal(keys[2 + i], (3, 3, cin, conv_out_channel),
                              jnp.float32) * 0.05
        gamma = 1.0 + 0.1 * jax.random.normal(keys[5 + i],
                                              (conv_out_channel,), jnp.float32)
        beta = 0.1 * jax.random.normal(keys[8 + i],
                                       (conv_out_channel,), jnp.float32)
        running_mean = jnp.zeros((conv_out_channel,), jnp.float32)
        running_var = jnp.ones((conv_out_channel,), jnp.float32)
        scale = gamma * lax.rsqrt(running_var + bn_eps)   # BN folded (eval mode)
        bias = beta - running_mean * scale
        conv_params.append((w, scale, bias))
        cin = conv_out_channel

    # deterministic synthetic voxel_info (unique coords per batch)
    per_batch = N_voxels // batch
    lin_idx = (np.arange(per_batch) * 5) % (ny * nx)
    coors_np = []
    for b in range(batch):
        for l in lin_idx:
            coors_np.append([b, 0, int(l) // nx, int(l) % nx])
    coors = jnp.asarray(np.array(coors_np, dtype=np.int32))
    feats = jax.random.normal(keys[1], (N_voxels, in_channel), jnp.float32)
    voxel_info = {'voxel_coors': coors, 'voxel_feats': feats}

    fwd = jax.jit(functools.partial(
        sstv2_forward, batch_size=batch, ny=ny, nx=nx,
        conv_dilation=conv_dilation, conv_padding=conv_padding))

    out = jax.block_until_ready(fwd(voxel_info, lin_w, lin_b, conv_params)[0])
    assert out.shape == (batch, conv_out_channel, ny, nx), out.shape
    assert bool(jnp.all(jnp.isfinite(out)))

    # correctness vs. f32 reference (kernel uses bf16 MXU operands -> loose tol)
    ref = _reference_forward(voxel_info, lin_w, lin_b, conv_params,
                             batch_size=batch, ny=ny, nx=nx,
                             dil=conv_dilation, pad=conv_padding)
    np.testing.assert_allclose(np.asarray(out), np.asarray(ref),
                               rtol=5e-2, atol=5e-2)

    print("KERNEL_OK")
</pallas_src>

<mosaic_0001>
module attributes {stable_mosaic.version = 11 : i64} {
  func.func @kernel(%arg0: i32, %arg1: memref<2x2xi32, #tpu.memory_space<smem>>, %arg2: memref<32x128xbf16, #tpu.memory_space<vmem>>, %arg3: memref<1x1x128xi32, #tpu.memory_space<vmem>>, %arg4: memref<1x384xf32, #tpu.memory_space<vmem>>, %arg5: memref<9x32x32xbf16, #tpu.memory_space<vmem>>, %arg6: memref<32x1xf32, #tpu.memory_space<vmem>>, %arg7: memref<32x1xf32, #tpu.memory_space<vmem>>, %arg8: memref<9x32x32xbf16, #tpu.memory_space<vmem>>, %arg9: memref<32x1xf32, #tpu.memory_space<vmem>>, %arg10: memref<32x1xf32, #tpu.memory_space<vmem>>, %arg11: memref<1x32x384xf32, #tpu.memory_space<vmem>>, %arg12: memref<32x512xbf16, #tpu.memory_space<vmem>>, %arg13: memref<32x384xf32, #tpu.memory_space<vmem>>) attributes {dimension_semantics = [#tpu.dimension_semantics<parallel>], iteration_bounds = array<i64: 2>, scalar_prefetch = 1 : i64, scratch_operands = 2 : i64, tpu.core_type = #tpu.core_type<tc>, window_params = [{pipeline_mode = #tpu.pipeline_mode<synchronous>, transform_indices = @transform_0, window_bounds = array<i64: 32, 128>}, {transform_indices = @transform_1, window_bounds = array<i64: 1, 1, 128>}, {pipeline_mode = #tpu.pipeline_mode<synchronous>, transform_indices = @transform_2, window_bounds = array<i64: 1, 384>}, {pipeline_mode = #tpu.pipeline_mode<synchronous>, transform_indices = @transform_3, window_bounds = array<i64: 9, 32, 32>}, {pipeline_mode = #tpu.pipeline_mode<synchronous>, transform_indices = @transform_4, window_bounds = array<i64: 32, 1>}, {pipeline_mode = #tpu.pipeline_mode<synchronous>, transform_indices = @transform_5, window_bounds = array<i64: 32, 1>}, {pipeline_mode = #tpu.pipeline_mode<synchronous>, transform_indices = @transform_6, window_bounds = array<i64: 9, 32, 32>}, {pipeline_mode = #tpu.pipeline_mode<synchronous>, transform_indices = @transform_7, window_bounds = array<i64: 32, 1>}, {pipeline_mode = #tpu.pipeline_mode<synchronous>, transform_indices = @transform_8, window_bounds = array<i64: 32, 1>}, {transform_indices = @transform_9, window_bounds = array<i64: 1, 32, 384>}]} {
    %cst = arith.constant 0.000000e+00 : bf16
    %0 = vector.broadcast %cst : bf16 to vector<32x512xbf16>
    %c0 = arith.constant 0 : index
    %c0_0 = arith.constant 0 : index
    %1 = vector.load %arg12[%c0, %c0_0] : memref<32x512xbf16, #tpu.memory_space<vmem>>, vector<32x512xbf16>
    tpu.vector_store %arg12[%c0, %c0_0], %0 {strides = array<i32>} : memref<32x512xbf16, #tpu.memory_space<vmem>>, vector<32x512xbf16>,
    %2 = arith.index_cast %arg0 : i32 to index
    %c0_1 = arith.constant 0 : index
    %3 = memref.load %arg1[%2, %c0_1] : memref<2x2xi32, #tpu.memory_space<smem>>
    %4 = arith.index_cast %arg0 : i32 to index
    %c1 = arith.constant 1 : index
    %5 = memref.load %arg1[%4, %c1] : memref<2x2xi32, #tpu.memory_space<smem>>
    %c0_i32 = arith.constant 0 : i32
    %6 = arith.subi %5, %3 : i32
    %7 = arith.addi %3, %6 : i32
    %c1_i32 = arith.constant 1 : i32
    scf.for %arg14 = %3 to %7 step %c1_i32  : i32 {
      %c128_i32 = arith.constant 128 : i32
      %156 = arith.muli %arg14, %c128_i32 : i32
      %157 = tpu.assume_multiple %156, 128 : i32
      %c0_186 = arith.constant 0 : index
      %158 = arith.index_cast %157 : i32 to index
      %159 = vector.load %arg2[%c0_186, %158] : memref<32x128xbf16, #tpu.memory_space<vmem>>, vector<32x128xbf16>
      %c0_187 = arith.constant 0 : index
      %c0_188 = arith.constant 0 : index
      %160 = arith.index_cast %157 : i32 to index
      %161 = vector.load %arg3[%c0_187, %c0_188, %160] : memref<1x1x128xi32, #tpu.memory_space<vmem>>, vector<1x1x128xi32>
      %162 = vector.shape_cast %161 : vector<1x1x128xi32> to vector<1x128xi32>
      %163 = tpu.iota {dimensions = array<i32: 0>} : vector<128x128xi32>
      %164 = tpu.iota {dimensions = array<i32: 1>} : vector<128x128xi32>
      %165 = arith.cmpi eq, %163, %164 : vector<128x128xi32>
      %166 = vector.shape_cast %162 : vector<1x128xi32> to vector<1x128xi32>
      %167 = vector.broadcast %166 : vector<1x128xi32> to vector<128x128xi32>
      %c0_i32_189 = arith.constant 0 : i32
      %168 = vector.broadcast %c0_i32_189 : i32 to vector<128x128xi32>
      %169 = arith.select %165, %167, %168 : vector<128x128xi1>, vector<128x128xi32>
      %cst_190 = arith.constant dense<0> : vector<128xi32>
      %170 = vector.multi_reduction <add>, %169, %cst_190 [1] : vector<128x128xi32> to vector<128xi32>
      %171 = vector.shape_cast %170 : vector<128xi32> to vector<128x1xi32>
      %172 = tpu.iota {dimensions = array<i32: 1>} : vector<128x512xi32>
      %c0_i32_191 = arith.constant 0 : i32
      %173 = vector.broadcast %c0_i32_191 : i32 to vector<128x512xi32>
      %174 = arith.addi %172, %173 : vector<128x512xi32>
      %175 = vector.broadcast %171 : vector<128x1xi32> to vector<128x512xi32>
      %176 = arith.cmpi eq, %174, %175 : vector<128x512xi32>
      %177 = arith.extui %176 : vector<128x512xi1> to vector<128x512xi32>
      %178 = arith.sitofp %177 : vector<128x512xi32> to vector<128x512xf32>
      %179 = arith.truncf %178 : vector<128x512xf32> to vector<128x512xbf16>
      %cst_192 = arith.constant dense<0.000000e+00> : vector<32x512xf32>
      %180 = tpu.matmul %159, %179, %cst_192 {dimension_numbers = #tpu.dot_dimension_numbers<[1], [0], [0], [1], [0, 0, 1, 1], [], []>} : vector<32x128xbf16>, vector<128x512xbf16>, vector<32x512xf32> -> vector<32x512xf32>
      %c0_193 = arith.constant 0 : index
      %c0_194 = arith.constant 0 : index
      %181 = vector.load %arg12[%c0_193, %c0_194] : memref<32x512xbf16, #tpu.memory_space<vmem>>, vector<32x512xbf16>
      %182 = arith.truncf %180 : vector<32x512xf32> to vector<32x512xbf16>
      %183 = arith.addf %181, %182 : vector<32x512xbf16>
      %c0_195 = arith.constant 0 : index
      %c0_196 = arith.constant 0 : index
      %184 = vector.load %arg12[%c0_195, %c0_196] : memref<32x512xbf16, #tpu.memory_space<vmem>>, vector<32x512xbf16>
      tpu.vector_store %arg12[%c0_195, %c0_196], %183 {strides = array<i32>} : memref<32x512xbf16, #tpu.memory_space<vmem>>, vector<32x512xbf16>,
    }
    %c0_2 = arith.constant 0 : index
    %c0_3 = arith.constant 0 : index
    %8 = vector.load %arg4[%c0_2, %c0_3] : memref<1x384xf32, #tpu.memory_space<vmem>>, vector<1x384xf32>
    %c0_4 = arith.constant 0 : index
    %c0_5 = arith.constant 0 : index
    %c0_6 = arith.constant 0 : index
    %9 = vector.load %arg5[%c0_4, %c0_5, %c0_6] : memref<9x32x32xbf16, #tpu.memory_space<vmem>>, vector<1x32x32xbf16>
    %10 = vector.shape_cast %9 : vector<1x32x32xbf16> to vector<32x32xbf16>
    %c0_7 = arith.constant 0 : index
    %c0_8 = arith.constant 0 : index
    %11 = vector.load %arg12[%c0_7, %c0_8] : memref<32x512xbf16, #tpu.memory_space<vmem>>, vector<32x384xbf16>
    %cst_9 = arith.constant dense<0.000000e+00> : vector<32x384xf32>
    %12 = tpu.matmul %10, %11, %cst_9 {dimension_numbers = #tpu.dot_dimension_numbers<[1], [0], [0], [1], [0, 0, 1, 1], [], []>} : vector<32x32xbf16>, vector<32x384xbf16>, vector<32x384xf32> -> vector<32x384xf32>
    %c0_10 = arith.constant 0 : index
    %c0_11 = arith.constant 0 : index
    %13 = vector.load %arg13[%c0_10, %c0_11] : memref<32x384xf32, #tpu.memory_space<vmem>>, vector<32x384xf32>
    tpu.vector_store %arg13[%c0_10, %c0_11], %12 {strides = array<i32>} : memref<32x384xf32, #tpu.memory_space<vmem>>, vector<32x384xf32>,
    %c1_12 = arith.constant 1 : index
    %c0_13 = arith.constant 0 : index
    %c0_14 = arith.constant 0 : index
    %14 = vector.load %arg5[%c1_12, %c0_13, %c0_14] : memref<9x32x32xbf16, #tpu.memory_space<vmem>>, vector<1x32x32xbf16>
    %15 = vector.shape_cast %14 : vector<1x32x32xbf16> to vector<32x32xbf16>
    %c0_15 = arith.constant 0 : index
    %c2 = arith.constant 2 : index
    %16 = vector.load %arg12[%c0_15, %c2] : memref<32x512xbf16, #tpu.memory_space<vmem>>, vector<32x384xbf16>
    %cst_16 = arith.constant dense<0.000000e+00> : vector<32x384xf32>
    %17 = tpu.matmul %15, %16, %cst_16 {dimension_numbers = #tpu.dot_dimension_numbers<[1], [0], [0], [1], [0, 0, 1, 1], [], []>} : vector<32x32xbf16>, vector<32x384xbf16>, vector<32x384xf32> -> vector<32x384xf32>
    %c0_17 = arith.constant 0 : index
    %c0_18 = arith.constant 0 : index
    %18 = vector.load %arg13[%c0_17, %c0_18] : memref<32x384xf32, #tpu.memory_space<vmem>>, vector<32x384xf32>
    %19 = arith.addf %18, %17 : vector<32x384xf32>
    %c0_19 = arith.constant 0 : index
    %c0_20 = arith.constant 0 : index
    %20 = vector.load %arg13[%c0_19, %c0_20] : memref<32x384xf32, #tpu.memory_space<vmem>>, vector<32x384xf32>
    tpu.vector_store %arg13[%c0_19, %c0_20], %19 {strides = array<i32>} : memref<32x384xf32, #tpu.memory_space<vmem>>, vector<32x384xf32>,
    %c2_21 = arith.constant 2 : index
    %c0_22 = arith.constant 0 : index
    %c0_23 = arith.constant 0 : index
    %21 = vector.load %arg5[%c2_21, %c0_22, %c0_23] : memref<9x32x32xbf16, #tpu.memory_space<vmem>>, vector<1x32x32xbf16>
    %22 = vector.shape_cast %21 : vector<1x32x32xbf16> to vector<32x32xbf16>
    %c0_24 = arith.constant 0 : index
    %c4 = arith.constant 4 : index
    %23 = vector.load %arg12[%c0_24, %c4] : memref<32x512xbf16, #tpu.memory_space<vmem>>, vector<32x384xbf16>
    %cst_25 = arith.constant dense<0.000000e+00> : vector<32x384xf32>
    %24 = tpu.matmul %22, %23, %cst_25 {dimension_numbers = #tpu.dot_dimension_numbers<[1], [0], [0], [1], [0, 0, 1, 1], [], []>} : vector<32x32xbf16>, vector<32x384xbf16>, vector<32x384xf32> -> vector<32x384xf32>
    %c0_26 = arith.constant 0 : index
    %c0_27 = arith.constant 0 : index
    %25 = vector.load %arg13[%c0_26, %c0_27] : memref<32x384xf32, #tpu.memory_space<vmem>>, vector<32x384xf32>
    %26 = arith.addf %25, %24 : vector<32x384xf32>
    %c0_28 = arith.constant 0 : index
    %c0_29 = arith.constant 0 : index
    %27 = vector.load %arg13[%c0_28, %c0_29] : memref<32x384xf32, #tpu.memory_space<vmem>>, vector<32x384xf32>
    tpu.vector_store %arg13[%c0_28, %c0_29], %26 {strides = array<i32>} : memref<32x384xf32, #tpu.memory_space<vmem>>, vector<32x384xf32>,
    %c3 = arith.constant 3 : index
    %c0_30 = arith.constant 0 : index
    %c0_31 = arith.constant 0 : index
    %28 = vector.load %arg5[%c3, %c0_30, %c0_31] : memref<9x32x32xbf16, #tpu.memory_space<vmem>>, vector<1x32x32xbf16>
    %29 = vector.shape_cast %28 : vector<1x32x32xbf16> to vector<32x32xbf16>
    %c0_32 = arith.constant 0 : index
    %c40 = arith.constant 40 : index
    %30 = vector.load %arg12[%c0_32, %c40] : memref<32x512xbf16, #tpu.memory_space<vmem>>, vector<32x384xbf16>
    %cst_33 = arith.constant dense<0.000000e+00> : vector<32x384xf32>
    %31 = tpu.matmul %29, %30, %cst_33 {dimension_numbers = #tpu.dot_dimension_numbers<[1], [0], [0], [1], [0, 0, 1, 1], [], []>} : vector<32x32xbf16>, vector<32x384xbf16>, vector<32x384xf32> -> vector<32x384xf32>
    %c0_34 = arith.constant 0 : index
    %c0_35 = arith.constant 0 : index
    %32 = vector.load %arg13[%c0_34, %c0_35] : memref<32x384xf32, #tpu.memory_space<vmem>>, vector<32x384xf32>
    %33 = arith.addf %32, %31 : vector<32x384xf32>
    %c0_36 = arith.constant 0 : index
    %c0_37 = arith.constant 0 : index
    %34 = vector.load %arg13[%c0_36, %c0_37] : memref<32x384xf32, #tpu.memory_space<vmem>>, vector<32x384xf32>
    tpu.vector_store %arg13[%c0_36, %c0_37], %33 {strides = array<i32>} : memref<32x384xf32, #tpu.memory_space<vmem>>, vector<32x384xf32>,
    %c4_38 = arith.constant 4 : index
    %c0_39 = arith.constant 0 : index
    %c0_40 = arith.constant 0 : index
    %35 = vector.load %arg5[%c4_38, %c0_39, %c0_40] : memref<9x32x32xbf16, #tpu.memory_space<vmem>>, vector<1x32x32xbf16>
    %36 = vector.shape_cast %35 : vector<1x32x32xbf16> to vector<32x32xbf16>
    %c0_41 = arith.constant 0 : index
    %c42 = arith.constant 42 : index
    %37 = vector.load %arg12[%c0_41, %c42] : memref<32x512xbf16, #tpu.memory_space<vmem>>, vector<32x384xbf16>
    %cst_42 = arith.constant dense<0.000000e+00> : vector<32x384xf32>
    %38 = tpu.matmul %36, %37, %cst_42 {dimension_numbers = #tpu.dot_dimension_numbers<[1], [0], [0], [1], [0, 0, 1, 1], [], []>} : vector<32x32xbf16>, vector<32x384xbf16>, vector<32x384xf32> -> vector<32x384xf32>
    %c0_43 = arith.constant 0 : index
    %c0_44 = arith.constant 0 : index
    %39 = vector.load %arg13[%c0_43, %c0_44] : memref<32x384xf32, #tpu.memory_space<vmem>>, vector<32x384xf32>
    %40 = arith.addf %39, %38 : vector<32x384xf32>
    %c0_45 = arith.constant 0 : index
    %c0_46 = arith.constant 0 : index
    %41 = vector.load %arg13[%c0_45, %c0_46] : memref<32x384xf32, #tpu.memory_space<vmem>>, vector<32x384xf32>
    tpu.vector_store %arg13[%c0_45, %c0_46], %40 {strides = array<i32>} : memref<32x384xf32, #tpu.memory_space<vmem>>, vector<32x384xf32>,
    %c5 = arith.constant 5 : index
    %c0_47 = arith.constant 0 : index
    %c0_48 = arith.constant 0 : index
    %42 = vector.load %arg5[%c5, %c0_47, %c0_48] : memref<9x32x32xbf16, #tpu.memory_space<vmem>>, vector<1x32x32xbf16>
    %43 = vector.shape_cast %42 : vector<1x32x32xbf16> to vector<32x32xbf16>
    %c0_49 = arith.constant 0 : index
    %c44 = arith.constant 44 : index
    %44 = vector.load %arg12[%c0_49, %c44] : memref<32x512xbf16, #tpu.memory_space<vmem>>, vector<32x384xbf16>
    %cst_50 = arith.constant dense<0.000000e+00> : vector<32x384xf32>
    %45 = tpu.matmul %43, %44, %cst_50 {dimension_numbers = #tpu.dot_dimension_numbers<[1], [0], [0], [1], [0, 0, 1, 1], [], []>} : vector<32x32xbf16>, vector<32x384xbf16>, vector<32x384xf32> -> vector<32x384xf32>
    %c0_51 = arith.constant 0 : index
    %c0_52 = arith.constant 0 : index
    %46 = vector.load %arg13[%c0_51, %c0_52] : memref<32x384xf32, #tpu.memory_space<vmem>>, vector<32x384xf32>
    %47 = arith.addf %46, %45 : vector<32x384xf32>
    %c0_53 = arith.constant 0 : index
    %c0_54 = arith.constant 0 : index
    %48 = vector.load %arg13[%c0_53, %c0_54] : memref<32x384xf32, #tpu.memory_space<vmem>>, vector<32x384xf32>
    tpu.vector_store %arg13[%c0_53, %c0_54], %47 {strides = array<i32>} : memref<32x384xf32, #tpu.memory_space<vmem>>, vector<32x384xf32>,
    %c6 = arith.constant 6 : index
    %c0_55 = arith.constant 0 : index
    %c0_56 = arith.constant 0 : index
    %49 = vector.load %arg5[%c6, %c0_55, %c0_56] : memref<9x32x32xbf16, #tpu.memory_space<vmem>>, vector<1x32x32xbf16>
    %50 = vector.shape_cast %49 : vector<1x32x32xbf16> to vector<32x32xbf16>
    %c0_57 = arith.constant 0 : index
    %c80 = arith.constant 80 : index
    %51 = vector.load %arg12[%c0_57, %c80] : memref<32x512xbf16, #tpu.memory_space<vmem>>, vector<32x384xbf16>
    %cst_58 = arith.constant dense<0.000000e+00> : vector<32x384xf32>
    %52 = tpu.matmul %50, %51, %cst_58 {dimension_numbers = #tpu.dot_dimension_numbers<[1], [0], [0], [1], [0, 0, 1, 1], [], []>} : vector<32x32xbf16>, vector<32x384xbf16>, vector<32x384xf32> -> vector<32x384xf32>
    %c0_59 = arith.constant 0 : index
    %c0_60 = arith.constant 0 : index
    %53 = vector.load %arg13[%c0_59, %c0_60] : memref<32x384xf32, #tpu.memory_space<vmem>>, vector<32x384xf32>
    %54 = arith.addf %53, %52 : vector<32x384xf32>
    %c0_61 = arith.constant 0 : index
    %c0_62 = arith.constant 0 : index
    %55 = vector.load %arg13[%c0_61, %c0_62] : memref<32x384xf32, #tpu.memory_space<vmem>>, vector<32x384xf32>
    tpu.vector_store %arg13[%c0_61, %c0_62], %54 {strides = array<i32>} : memref<32x384xf32, #tpu.memory_space<vmem>>, vector<32x384xf32>,
    %c7 = arith.constant 7 : index
    %c0_63 = arith.constant 0 : index
    %c0_64 = arith.constant 0 : index
    %56 = vector.load %arg5[%c7, %c0_63, %c0_64] : memref<9x32x32xbf16, #tpu.memory_space<vmem>>, vector<1x32x32xbf16>
    %57 = vector.shape_cast %56 : vector<1x32x32xbf16> to vector<32x32xbf16>
    %c0_65 = arith.constant 0 : index
    %c82 = arith.constant 82 : index
    %58 = vector.load %arg12[%c0_65, %c82] : memref<32x512xbf16, #tpu.memory_space<vmem>>, vector<32x384xbf16>
    %cst_66 = arith.constant dense<0.000000e+00> : vector<32x384xf32>
    %59 = tpu.matmul %57, %58, %cst_66 {dimension_numbers = #tpu.dot_dimension_numbers<[1], [0], [0], [1], [0, 0, 1, 1], [], []>} : vector<32x32xbf16>, vector<32x384xbf16>, vector<32x384xf32> -> vector<32x384xf32>
    %c0_67 = arith.constant 0 : index
    %c0_68 = arith.constant 0 : index
    %60 = vector.load %arg13[%c0_67, %c0_68] : memref<32x384xf32, #tpu.memory_space<vmem>>, vector<32x384xf32>
    %61 = arith.addf %60, %59 : vector<32x384xf32>
    %c0_69 = arith.constant 0 : index
    %c0_70 = arith.constant 0 : index
    %62 = vector.load %arg13[%c0_69, %c0_70] : memref<32x384xf32, #tpu.memory_space<vmem>>, vector<32x384xf32>
    tpu.vector_store %arg13[%c0_69, %c0_70], %61 {strides = array<i32>} : memref<32x384xf32, #tpu.memory_space<vmem>>, vector<32x384xf32>,
    %c8 = arith.constant 8 : index
    %c0_71 = arith.constant 0 : index
    %c0_72 = arith.constant 0 : index
    %63 = vector.load %arg5[%c8, %c0_71, %c0_72] : memref<9x32x32xbf16, #tpu.memory_space<vmem>>, vector<1x32x32xbf16>
    %64 = vector.shape_cast %63 : vector<1x32x32xbf16> to vector<32x32xbf16>
    %c0_73 = arith.constant 0 : index
    %c84 = arith.constant 84 : index
    %65 = vector.load %arg12[%c0_73, %c84] : memref<32x512xbf16, #tpu.memory_space<vmem>>, vector<32x384xbf16>
    %cst_74 = arith.constant dense<0.000000e+00> : vector<32x384xf32>
    %66 = tpu.matmul %64, %65, %cst_74 {dimension_numbers = #tpu.dot_dimension_numbers<[1], [0], [0], [1], [0, 0, 1, 1], [], []>} : vector<32x32xbf16>, vector<32x384xbf16>, vector<32x384xf32> -> vector<32x384xf32>
    %c0_75 = arith.constant 0 : index
    %c0_76 = arith.constant 0 : index
    %67 = vector.load %arg13[%c0_75, %c0_76] : memref<32x384xf32, #tpu.memory_space<vmem>>, vector<32x384xf32>
    %68 = arith.addf %67, %66 : vector<32x384xf32>
    %c0_77 = arith.constant 0 : index
    %c0_78 = arith.constant 0 : index
    %69 = vector.load %arg13[%c0_77, %c0_78] : memref<32x384xf32, #tpu.memory_space<vmem>>, vector<32x384xf32>
    tpu.vector_store %arg13[%c0_77, %c0_78], %68 {strides = array<i32>} : memref<32x384xf32, #tpu.memory_space<vmem>>, vector<32x384xf32>,
    %c0_79 = arith.constant 0 : index
    %c0_80 = arith.constant 0 : index
    %70 = vector.load %arg13[%c0_79, %c0_80] : memref<32x384xf32, #tpu.memory_space<vmem>>, vector<32x384xf32>
    %c0_81 = arith.constant 0 : index
    %c0_82 = arith.constant 0 : index
    %71 = vector.load %arg6[%c0_81, %c0_82] : memref<32x1xf32, #tpu.memory_space<vmem>>, vector<32x1xf32>
    %72 = vector.broadcast %71 : vector<32x1xf32> to vector<32x384xf32>
    %73 = arith.mulf %70, %72 : vector<32x384xf32>
    %c0_83 = arith.constant 0 : index
    %c0_84 = arith.constant 0 : index
    %74 = vector.load %arg7[%c0_83, %c0_84] : memref<32x1xf32, #tpu.memory_space<vmem>>, vector<32x1xf32>
    %75 = vector.broadcast %74 : vector<32x1xf32> to vector<32x384xf32>
    %76 = arith.addf %73, %75 : vector<32x384xf32>
    %cst_85 = arith.constant 0.000000e+00 : f32
    %77 = vector.broadcast %cst_85 : f32 to vector<32x384xf32>
    %78 = arith.maximumf %76, %77 : vector<32x384xf32>
    %79 = vector.broadcast %8 : vector<1x384xf32> to vector<32x384xf32>
    %80 = arith.mulf %78, %79 : vector<32x384xf32>
    %81 = arith.truncf %80 : vector<32x384xf32> to vector<32x384xbf16>
    %c0_86 = arith.constant 0 : index
    %c42_87 = arith.constant 42 : index
    %82 = vector.load %arg12[%c0_86, %c42_87] : memref<32x512xbf16, #tpu.memory_space<vmem>>, vector<32x384xbf16>
    tpu.vector_store %arg12[%c0_86, %c42_87], %81 {strides = array<i32>} : memref<32x512xbf16, #tpu.memory_space<vmem>>, vector<32x384xbf16>,
    %c0_88 = arith.constant 0 : index
    %c0_89 = arith.constant 0 : index
    %c0_90 = arith.constant 0 : index
    %83 = vector.load %arg8[%c0_88, %c0_89, %c0_90] : memref<9x32x32xbf16, #tpu.memory_space<vmem>>, vector<1x32x32xbf16>
    %84 = vector.shape_cast %83 : vector<1x32x32xbf16> to vector<32x32xbf16>
    %c0_91 = arith.constant 0 : index
    %c0_92 = arith.constant 0 : index
    %85 = vector.load %arg12[%c0_91, %c0_92] : memref<32x512xbf16, #tpu.memory_space<vmem>>, vector<32x384xbf16>
    %cst_93 = arith.constant dense<0.000000e+00> : vector<32x384xf32>
    %86 = tpu.matmul %84, %85, %cst_93 {dimension_numbers = #tpu.dot_dimension_numbers<[1], [0], [0], [1], [0, 0, 1, 1], [], []>} : vector<32x32xbf16>, vector<32x384xbf16>, vector<32x384xf32> -> vector<32x384xf32>
    %c0_94 = arith.constant 0 : index
    %c0_95 = arith.constant 0 : index
    %87 = vector.load %arg13[%c0_94, %c0_95] : memref<32x384xf32, #tpu.memory_space<vmem>>, vector<32x384xf32>
    tpu.vector_store %arg13[%c0_94, %c0_95], %86 {strides = array<i32>} : memref<32x384xf32, #tpu.memory_space<vmem>>, vector<32x384xf32>,
    %c1_96 = arith.constant 1 : index
    %c0_97 = arith.constant 0 : index
    %c0_98 = arith.constant 0 : index
    %88 = vector.load %arg8[%c1_96, %c0_97, %c0_98] : memref<9x32x32xbf16, #tpu.memory_space<vmem>>, vector<1x32x32xbf16>
    %89 = vector.shape_cast %88 : vector<1x32x32xbf16> to vector<32x32xbf16>
    %c0_99 = arith.constant 0 : index
    %c2_100 = arith.constant 2 : index
    %90 = vector.load %arg12[%c0_99, %c2_100] : memref<32x512xbf16, #tpu.memory_space<vmem>>, vector<32x384xbf16>
    %cst_101 = arith.constant dense<0.000000e+00> : vector<32x384xf32>
    %91 = tpu.matmul %89, %90, %cst_101 {dimension_numbers = #tpu.dot_dimension_numbers<[1], [0], [0], [1], [0, 0, 1, 1], [], []>} : vector<32x32xbf16>, vector<32x384xbf16>, vector<32x384xf32> -> vector<32x384xf32>
    %c0_102 = arith.constant 0 : index
    %c0_103 = arith.constant 0 : index
    %92 = vector.load %arg13[%c0_102, %c0_103] : memref<32x384xf32, #tpu.memory_space<vmem>>, vector<32x384xf32>
    %93 = arith.addf %92, %91 : vector<32x384xf32>
    %c0_104 = arith.constant 0 : index
    %c0_105 = arith.constant 0 : index
    %94 = vector.load %arg13[%c0_104, %c0_105] : memref<32x384xf32, #tpu.memory_space<vmem>>, vector<32x384xf32>
    tpu.vector_store %arg13[%c0_104, %c0_105], %93 {strides = array<i32>} : memref<32x384xf32, #tpu.memory_space<vmem>>, vector<32x384xf32>,
    %c2_106 = arith.constant 2 : index
    %c0_107 = arith.constant 0 : index
    %c0_108 = arith.constant 0 : index
    %95 = vector.load %arg8[%c2_106, %c0_107, %c0_108] : memref<9x32x32xbf16, #tpu.memory_space<vmem>>, vector<1x32x32xbf16>
    %96 = vector.shape_cast %95 : vector<1x32x32xbf16> to vector<32x32xbf16>
    %c0_109 = arith.constant 0 : index
    %c4_110 = arith.constant 4 : index
    %97 = vector.load %arg12[%c0_109, %c4_110] : memref<32x512xbf16, #tpu.memory_space<vmem>>, vector<32x384xbf16>
    %cst_111 = arith.constant dense<0.000000e+00> : vector<32x384xf32>
    %98 = tpu.matmul %96, %97, %cst_111 {dimension_numbers = #tpu.dot_dimension_numbers<[1], [0], [0], [1], [0, 0, 1, 1], [], []>} : vector<32x32xbf16>, vector<32x384xbf16>, vector<32x384xf32> -> vector<32x384xf32>
    %c0_112 = arith.constant 0 : index
    %c0_113 = arith.constant 0 : index
    %99 = vector.load %arg13[%c0_112, %c0_113] : memref<32x384xf32, #tpu.memory_space<vmem>>, vector<32x384xf32>
    %100 = arith.addf %99, %98 : vector<32x384xf32>
    %c0_114 = arith.constant 0 : index
    %c0_115 = arith.constant 0 : index
    %101 = vector.load %arg13[%c0_114, %c0_115] : memref<32x384xf32, #tpu.memory_space<vmem>>, vector<32x384xf32>
    tpu.vector_store %arg13[%c0_114, %c0_115], %100 {strides = array<i32>} : memref<32x384xf32, #tpu.memory_space<vmem>>, vector<32x384xf32>,
    %c3_116 = arith.constant 3 : index
    %c0_117 = arith.constant 0 : index
    %c0_118 = arith.constant 0 : index
    %102 = vector.load %arg8[%c3_116, %c0_117, %c0_118] : memref<9x32x32xbf16, #tpu.memory_space<vmem>>, vector<1x32x32xbf16>
    %103 = vector.shape_cast %102 : vector<1x32x32xbf16> to vector<32x32xbf16>
    %c0_119 = arith.constant 0 : index
    %c40_120 = arith.constant 40 : index
    %104 = vector.load %arg12[%c0_119, %c40_120] : memref<32x512xbf16, #tpu.memory_space<vmem>>, vector<32x384xbf16>
    %cst_121 = arith.constant dense<0.000000e+00> : vector<32x384xf32>
    %105 = tpu.matmul %103, %104, %cst_121 {dimension_numbers = #tpu.dot_dimension_numbers<[1], [0], [0], [1], [0, 0, 1, 1], [], []>} : vector<32x32xbf16>, vector<32x384xbf16>, vector<32x384xf32> -> vector<32x384xf32>
    %c0_122 = arith.constant 0 : index
    %c0_123 = arith.constant 0 : index
    %106 = vector.load %arg13[%c0_122, %c0_123] : memref<32x384xf32, #tpu.memory_space<vmem>>, vector<32x384xf32>
    %107 = arith.addf %106, %105 : vector<32x384xf32>
    %c0_124 = arith.constant 0 : index
    %c0_125 = arith.constant 0 : index
    %108 = vector.load %arg13[%c0_124, %c0_125] : memref<32x384xf32, #tpu.memory_space<vmem>>, vector<32x384xf32>
    tpu.vector_store %arg13[%c0_124, %c0_125], %107 {strides = array<i32>} : memref<32x384xf32, #tpu.memory_space<vmem>>, vector<32x384xf32>,
    %c4_126 = arith.constant 4 : index
    %c0_127 = arith.constant 0 : index
    %c0_128 = arith.constant 0 : index
    %109 = vector.load %arg8[%c4_126, %c0_127, %c0_128] : memref<9x32x32xbf16, #tpu.memory_space<vmem>>, vector<1x32x32xbf16>
    %110 = vector.shape_cast %109 : vector<1x32x32xbf16> to vector<32x32xbf16>
    %c0_129 = arith.constant 0 : index
    %c42_130 = arith.constant 42 : index
    %111 = vector.load %arg12[%c0_129, %c42_130] : memref<32x512xbf16, #tpu.memory_space<vmem>>, vector<32x384xbf16>
    %cst_131 = arith.constant dense<0.000000e+00> : vector<32x384xf32>
    %112 = tpu.matmul %110, %111, %cst_131 {dimension_numbers = #tpu.dot_dimension_numbers<[1], [0], [0], [1], [0, 0, 1, 1], [], []>} : vector<32x32xbf16>, vector<32x384xbf16>, vector<32x384xf32> -> vector<32x384xf32>
    %c0_132 = arith.constant 0 : index
    %c0_133 = arith.constant 0 : index
    %113 = vector.load %arg13[%c0_132, %c0_133] : memref<32x384xf32, #tpu.memory_space<vmem>>, vector<32x384xf32>
    %114 = arith.addf %113, %112 : vector<32x384xf32>
    %c0_134 = arith.constant 0 : index
    %c0_135 = arith.constant 0 : index
    %115 = vector.load %arg13[%c0_134, %c0_135] : memref<32x384xf32, #tpu.memory_space<vmem>>, vector<32x384xf32>
    tpu.vector_store %arg13[%c0_134, %c0_135], %114 {strides = array<i32>} : memref<32x384xf32, #tpu.memory_space<vmem>>, vector<32x384xf32>,
    %c5_136 = arith.constant 5 : index
    %c0_137 = arith.constant 0 : index
    %c0_138 = arith.constant 0 : index
    %116 = vector.load %arg8[%c5_136, %c0_137, %c0_138] : memref<9x32x32xbf16, #tpu.memory_space<vmem>>, vector<1x32x32xbf16>
    %117 = vector.shape_cast %116 : vector<1x32x32xbf16> to vector<32x32xbf16>
    %c0_139 = arith.constant 0 : index
    %c44_140 = arith.constant 44 : index
    %118 = vector.load %arg12[%c0_139, %c44_140] : memref<32x512xbf16, #tpu.memory_space<vmem>>, vector<32x384xbf16>
    %cst_141 = arith.constant dense<0.000000e+00> : vector<32x384xf32>
    %119 = tpu.matmul %117, %118, %cst_141 {dimension_numbers = #tpu.dot_dimension_numbers<[1], [0], [0], [1], [0, 0, 1, 1], [], []>} : vector<32x32xbf16>, vector<32x384xbf16>, vector<32x384xf32> -> vector<32x384xf32>
    %c0_142 = arith.constant 0 : index
    %c0_143 = arith.constant 0 : index
    %120 = vector.load %arg13[%c0_142, %c0_143] : memref<32x384xf32, #tpu.memory_space<vmem>>, vector<32x384xf32>
    %121 = arith.addf %120, %119 : vector<32x384xf32>
    %c0_144 = arith.constant 0 : index
    %c0_145 = arith.constant 0 : index
    %122 = vector.load %arg13[%c0_144, %c0_145] : memref<32x384xf32, #tpu.memory_space<vmem>>, vector<32x384xf32>
    tpu.vector_store %arg13[%c0_144, %c0_145], %121 {strides = array<i32>} : memref<32x384xf32, #tpu.memory_space<vmem>>, vector<32x384xf32>,
    %c6_146 = arith.constant 6 : index
    %c0_147 = arith.constant 0 : index
    %c0_148 = arith.constant 0 : index
    %123 = vector.load %arg8[%c6_146, %c0_147, %c0_148] : memref<9x32x32xbf16, #tpu.memory_space<vmem>>, vector<1x32x32xbf16>
    %124 = vector.shape_cast %123 : vector<1x32x32xbf16> to vector<32x32xbf16>
    %c0_149 = arith.constant 0 : index
    %c80_150 = arith.constant 80 : index
    %125 = vector.load %arg12[%c0_149, %c80_150] : memref<32x512xbf16, #tpu.memory_space<vmem>>, vector<32x384xbf16>
    %cst_151 = arith.constant dense<0.000000e+00> : vector<32x384xf32>
    %126 = tpu.matmul %124, %125, %cst_151 {dimension_numbers = #tpu.dot_dimension_numbers<[1], [0], [0], [1], [0, 0, 1, 1], [], []>} : vector<32x32xbf16>, vector<32x384xbf16>, vector<32x384xf32> -> vector<32x384xf32>
    %c0_152 = arith.constant 0 : index
    %c0_153 = arith.constant 0 : index
    %127 = vector.load %arg13[%c0_152, %c0_153] : memref<32x384xf32, #tpu.memory_space<vmem>>, vector<32x384xf32>
    %128 = arith.addf %127, %126 : vector<32x384xf32>
    %c0_154 = arith.constant 0 : index
    %c0_155 = arith.constant 0 : index
    %129 = vector.load %arg13[%c0_154, %c0_155] : memref<32x384xf32, #tpu.memory_space<vmem>>, vector<32x384xf32>
    tpu.vector_store %arg13[%c0_154, %c0_155], %128 {strides = array<i32>} : memref<32x384xf32, #tpu.memory_space<vmem>>, vector<32x384xf32>,
    %c7_156 = arith.constant 7 : index
    %c0_157 = arith.constant 0 : index
    %c0_158 = arith.constant 0 : index
    %130 = vector.load %arg8[%c7_156, %c0_157, %c0_158] : memref<9x32x32xbf16, #tpu.memory_space<vmem>>, vector<1x32x32xbf16>
    %131 = vector.shape_cast %130 : vector<1x32x32xbf16> to vector<32x32xbf16>
    %c0_159 = arith.constant 0 : index
    %c82_160 = arith.constant 82 : index
    %132 = vector.load %arg12[%c0_159, %c82_160] : memref<32x512xbf16, #tpu.memory_space<vmem>>, vector<32x384xbf16>
    %cst_161 = arith.constant dense<0.000000e+00> : vector<32x384xf32>
    %133 = tpu.matmul %131, %132, %cst_161 {dimension_numbers = #tpu.dot_dimension_numbers<[1], [0], [0], [1], [0, 0, 1, 1], [], []>} : vector<32x32xbf16>, vector<32x384xbf16>, vector<32x384xf32> -> vector<32x384xf32>
    %c0_162 = arith.constant 0 : index
    %c0_163 = arith.constant 0 : index
    %134 = vector.load %arg13[%c0_162, %c0_163] : memref<32x384xf32, #tpu.memory_space<vmem>>, vector<32x384xf32>
    %135 = arith.addf %134, %133 : vector<32x384xf32>
    %c0_164 = arith.constant 0 : index
    %c0_165 = arith.constant 0 : index
    %136 = vector.load %arg13[%c0_164, %c0_165] : memref<32x384xf32, #tpu.memory_space<vmem>>, vector<32x384xf32>
    tpu.vector_store %arg13[%c0_164, %c0_165], %135 {strides = array<i32>} : memref<32x384xf32, #tpu.memory_space<vmem>>, vector<32x384xf32>,
    %c8_166 = arith.constant 8 : index
    %c0_167 = arith.constant 0 : index
    %c0_168 = arith.constant 0 : index
    %137 = vector.load %arg8[%c8_166, %c0_167, %c0_168] : memref<9x32x32xbf16, #tpu.memory_space<vmem>>, vector<1x32x32xbf16>
    %138 = vector.shape_cast %137 : vector<1x32x32xbf16> to vector<32x32xbf16>
    %c0_169 = arith.constant 0 : index
    %c84_170 = arith.constant 84 : index
    %139 = vector.load %arg12[%c0_169, %c84_170] : memref<32x512xbf16, #tpu.memory_space<vmem>>, vector<32x384xbf16>
    %cst_171 = arith.constant dense<0.000000e+00> : vector<32x384xf32>
    %140 = tpu.matmul %138, %139, %cst_171 {dimension_numbers = #tpu.dot_dimension_numbers<[1], [0], [0], [1], [0, 0, 1, 1], [], []>} : vector<32x32xbf16>, vector<32x384xbf16>, vector<32x384xf32> -> vector<32x384xf32>
    %c0_172 = arith.constant 0 : index
    %c0_173 = arith.constant 0 : index
    %141 = vector.load %arg13[%c0_172, %c0_173] : memref<32x384xf32, #tpu.memory_space<vmem>>, vector<32x384xf32>
    %142 = arith.addf %141, %140 : vector<32x384xf32>
    %c0_174 = arith.constant 0 : index
    %c0_175 = arith.constant 0 : index
    %143 = vector.load %arg13[%c0_174, %c0_175] : memref<32x384xf32, #tpu.memory_space<vmem>>, vector<32x384xf32>
    tpu.vector_store %arg13[%c0_174, %c0_175], %142 {strides = array<i32>} : memref<32x384xf32, #tpu.memory_space<vmem>>, vector<32x384xf32>,
    %c0_176 = arith.constant 0 : index
    %c0_177 = arith.constant 0 : index
    %144 = vector.load %arg13[%c0_176, %c0_177] : memref<32x384xf32, #tpu.memory_space<vmem>>, vector<32x384xf32>
    %c0_178 = arith.constant 0 : index
    %c0_179 = arith.constant 0 : index
    %145 = vector.load %arg9[%c0_178, %c0_179] : memref<32x1xf32, #tpu.memory_space<vmem>>, vector<32x1xf32>
    %146 = vector.broadcast %145 : vector<32x1xf32> to vector<32x384xf32>
    %147 = arith.mulf %144, %146 : vector<32x384xf32>
    %c0_180 = arith.constant 0 : index
    %c0_181 = arith.constant 0 : index
    %148 = vector.load %arg10[%c0_180, %c0_181] : memref<32x1xf32, #tpu.memory_space<vmem>>, vector<32x1xf32>
    %149 = vector.broadcast %148 : vector<32x1xf32> to vector<32x384xf32>
    %150 = arith.addf %147, %149 : vector<32x384xf32>
    %cst_182 = arith.constant 0.000000e+00 : f32
    %151 = vector.broadcast %cst_182 : f32 to vector<32x384xf32>
    %152 = arith.maximumf %150, %151 : vector<32x384xf32>
    %c0_183 = arith.constant 0 : index
    %c0_184 = arith.constant 0 : index
    %c0_185 = arith.constant 0 : index
    %153 = vector.load %arg11[%c0_183, %c0_184, %c0_185] : memref<1x32x384xf32, #tpu.memory_space<vmem>>, vector<1x32x384xf32>
    %154 = vector.shape_cast %153 : vector<1x32x384xf32> to vector<32x384xf32>
    %155 = vector.shape_cast %152 : vector<32x384xf32> to vector<1x32x384xf32>
    tpu.vector_store %arg11[%c0_183, %c0_184, %c0_185], %155 {strides = array<i32>} : memref<1x32x384xf32, #tpu.memory_space<vmem>>, vector<1x32x384xf32>,
    return
  }
  func.func @transform_0(%arg0: i32, %arg1: memref<2x2xi32, #tpu.memory_space<smem>>) -> (i32, i32) {
    %c0_i32 = arith.constant 0 : i32
    %c0_i32_0 = arith.constant 0 : i32
    %c0_i32_1 = arith.constant 0 : i32
    return %c0_i32, %c0_i32_0 : i32, i32
  }
  func.func @transform_1(%arg0: i32, %arg1: memref<2x2xi32, #tpu.memory_space<smem>>) -> (i32, i32, i32) {
    %c0_i32 = arith.constant 0 : i32
    %c0_i32_0 = arith.constant 0 : i32
    %c0_i32_1 = arith.constant 0 : i32
    return %arg0, %c0_i32, %c0_i32_0 : i32, i32, i32
  }
  func.func @transform_2(%arg0: i32, %arg1: memref<2x2xi32, #tpu.memory_space<smem>>) -> (i32, i32) {
    %c0_i32 = arith.constant 0 : i32
    %c0_i32_0 = arith.constant 0 : i32
    %c0_i32_1 = arith.constant 0 : i32
    return %c0_i32, %c0_i32_0 : i32, i32
  }
  func.func @transform_3(%arg0: i32, %arg1: memref<2x2xi32, #tpu.memory_space<smem>>) -> (i32, i32, i32) {
    %c0_i32 = arith.constant 0 : i32
    %c0_i32_0 = arith.constant 0 : i32
    %c0_i32_1 = arith.constant 0 : i32
    %c0_i32_2 = arith.constant 0 : i32
    return %c0_i32, %c0_i32_0, %c0_i32_1 : i32, i32, i32
  }
  func.func @transform_4(%arg0: i32, %arg1: memref<2x2xi32, #tpu.memory_space<smem>>) -> (i32, i32) {
    %c0_i32 = arith.constant 0 : i32
    %c0_i32_0 = arith.constant 0 : i32
    %c0_i32_1 = arith.constant 0 : i32
    return %c0_i32, %c0_i32_0 : i32, i32
  }
  func.func @transform_5(%arg0: i32, %arg1: memref<2x2xi32, #tpu.memory_space<smem>>) -> (i32, i32) {
    %c0_i32 = arith.constant 0 : i32
    %c0_i32_0 = arith.constant 0 : i32
    %c0_i32_1 = arith.constant 0 : i32
    return %c0_i32, %c0_i32_0 : i32, i32
  }
  func.func @transform_6(%arg0: i32, %arg1: memref<2x2xi32, #tpu.memory_space<smem>>) -> (i32, i32, i32) {
    %c0_i32 = arith.constant 0 : i32
    %c0_i32_0 = arith.constant 0 : i32
    %c0_i32_1 = arith.constant 0 : i32
    %c0_i32_2 = arith.constant 0 : i32
    return %c0_i32, %c0_i32_0, %c0_i32_1 : i32, i32, i32
  }
  func.func @transform_7(%arg0: i32, %arg1: memref<2x2xi32, #tpu.memory_space<smem>>) -> (i32, i32) {
    %c0_i32 = arith.constant 0 : i32
    %c0_i32_0 = arith.constant 0 : i32
    %c0_i32_1 = arith.constant 0 : i32
    return %c0_i32, %c0_i32_0 : i32, i32
  }
  func.func @transform_8(%arg0: i32, %arg1: memref<2x2xi32, #tpu.memory_space<smem>>) -> (i32, i32) {
    %c0_i32 = arith.constant 0 : i32
    %c0_i32_0 = arith.constant 0 : i32
    %c0_i32_1 = arith.constant 0 : i32
    return %c0_i32, %c0_i32_0 : i32, i32
  }
  func.func @transform_9(%arg0: i32, %arg1: memref<2x2xi32, #tpu.memory_space<smem>>) -> (i32, i32, i32) {
    %c0_i32 = arith.constant 0 : i32
    %c0_i32_0 = arith.constant 0 : i32
    %c0_i32_1 = arith.constant 0 : i32
    return %arg0, %c0_i32, %c0_i32_0 : i32, i32, i32
  }
}

</mosaic_0001>

<bundles_post_ra>
// kernel: sstv2_forward.1
= control target key start
LH: loop header
LB: loop body
LE: loop exit
PB: predicated region body
PF: predicated region fallthrough
CT: control target
= control target key end

     0   :  { %s6747_s0 = inlined_call_operand.vmem [shape: s32[2,2], index: 0, kind: input, shape index: {}]   ;;  %s6748_s1 = inlined_call_operand.vmem [shape: bf16[32,128], index: 1, kind: input, shape index: {}]   ;;  %s6749_s2 = inlined_call_operand.vmem [shape: s32[2,1,128], index: 2, kind: input, shape index: {}]   ;;  %s6750_s3 = inlined_call_operand.vmem [shape: f32[1,384], index: 3, kind: input, shape index: {}]   ;;  %s6751_s4 = inlined_call_operand.vmem [shape: bf16[9,32,32], index: 4, kind: input, shape index: {}]   ;;  %s6752_s5 = inlined_call_operand.vmem [shape: f32[32,1], index: 5, kind: input, shape index: {}]   ;;  %s6753_s6 = inlined_call_operand.vmem [shape: f32[32,1], index: 6, kind: input, shape index: {}]   ;;  %s6754_s7 = inlined_call_operand.vmem [shape: bf16[9,32,32], index: 7, kind: input, shape index: {}]   ;;  %s6755_s8 = inlined_call_operand.vmem [shape: f32[32,1], index: 8, kind: input, shape index: {}]   ;;  %s6756_s9 = inlined_call_operand.vmem [shape: f32[32,1], index: 9, kind: input, shape index: {}]   ;;  %s6757_s10 = inlined_call_operand.vmem [shape: f32[2,32,384], index: 10, kind: output, shape index: {}]  }
   0x1   :  { %s15_s15 = sshll.u32 %s6747_s0, 4  ;;  %s16_s15 = int_to_ptr.vmem [resolvable:$true] %s15_s15 }
   0x2   :  { %s5657_s16 = scalar_lea.vmem %s16_s15, 32  ;;  %p5662_p1 = scmp.lt.s32.totalorder %s16_s15, %s16_s15 }
   0x3   :  { %p5658_p0 = scmp.ne.s32.totalorder %s16_s15, %s5657_s16  ;;  %p5663_p2 = scmp.lt.s32.totalorder %s5657_s16, %s5657_s16 }
   0x5   :  { %p5664_p3 = por %p5663_p2, %p5662_p1 }
   0x7   :  { %p5665_p4 = pnand %p5664_p3, %p5658_p0 }
   0x9   :  { %5668 = shalt.err (!%p5665_p4)  }
   0xa   :  { %s5687_s17 = smov [#allocation5]  }
   0xb   :  { %18 = dma.vmem_to_smem %s16_s15, 32, %s5687_s17, [#allocation4] }
   0xc   :  { %5677 = dma.done.wait [#allocation4], 32 }
   0xd   :  { %5678 = vsyncadd [#allocation4], 4294967264 }
   0xe   :  { %20 = sfence }
   0xf   :  { %s5758_s18 = smov 0  }
  0x10 LB: > { %s4865_s0 = sadd.s32 4294967295, %s5681_s18   ;;  %p4869_p5 = scmp.ge.s32.totalorder %s5681_s18, 1  ;;  %s5681_s18 = sphi %s5758_s18, %s26_s18  }
  0x11   : > { %p292_p6 = scmp.lt.s32.totalorder %s5681_s18, 3 }
  0x13   : > { %p293_p7 = pnand %p4869_p5, %p292_p6 }
  0x14   : > { %p326_p8 = scmp.lt.s32.totalorder (!%p293_p7), %s4865_s0, 1  ;;  %s4871_s19 = sshll.u32 (!%p293_p7), %s4865_s0, 7  ;;  %v5688_v0 = vmov (!%p293_p7), 0  }
  0x15   : > { %296 = sbr.rel (%p293_p7) target bundleno = 1578 (0x62a), region = 56  ;;  %335 = vst [vmem:[#allocation2] sm:$0xff] (!%p293_p7), %v5688_v0  ;;  %336 = vst [vmem:[#allocation2 + $0x8] sm:$0xff] (!%p293_p7), %v5688_v0  ;;  %s344_s20 = sld [smem:[#allocation5 + %s4871_s19]] (!%p293_p7)  }
  0x16   : > { %337 = vst [vmem:[#allocation2 + $0x10] sm:$0xff] (!%p293_p7), %v5688_v0  ;;  %338 = vst [vmem:[#allocation2 + $0x18] sm:$0xff] (!%p293_p7), %v5688_v0  ;;  %s345_s21 = sadd.s32 (!%p293_p7), 1, %s4871_s19 }
  0x17   : > { %339 = vst [vmem:[#allocation2 + $0x20] sm:$0xff] (!%p293_p7), %v5688_v0  ;;  %340 = vst [vmem:[#allocation2 + $0x28] sm:$0xff] (!%p293_p7), %v5688_v0  ;;  %s5776_s22 = sld [smem:[#allocation5 + %s345_s21]] (!%p293_p7) }
  0x18   : > { %341 = vst [vmem:[#allocation2 + $0x30] sm:$0xff] (!%p293_p7), %v5688_v0  ;;  %342 = vst [vmem:[#allocation2 + $0x38] sm:$0xff] (!%p293_p7), %v5688_v0 }
  0x1c   : > { %s6759_s0 = smov (!%p326_p8, %s4865_s0), 1 }
  0x1d   : > { %s328_s25 = scalar_lea.vmem %s6749_s2, %s6759_s0  ;;  %s5587_s26 = smul.u32 96, %s6759_s0 }
  0x1e   : > { %p4841_p9 = scmp.ge.s32.totalorder %s344_s20, %s5776_s22 }
  0x1f   : > { %s5786_s29 = scalar_lea.vmem %s6757_s10, %s5587_s26 }
  0x20   : > { %4842 = sbr.rel (%p4841_p9) target bundleno = 492 (0x1ec), region = 105 }
  0x27 LB: >> { %v364_v1 = vlaneseq  ;;  %s4872_s30 = sshll.u32 %s5685_s20, 7  ;;  %s350_s20 = sadd.s32 1, %s5685_s20   ;;  %s5685_s20 = sphi %s344_s20, %s350_s20  }
  0x28   : >> { %s5799_s11 = sshra.s32 %s4872_s30, 7  ;;  %p349_p10 = scmp.ge.s32.totalorder %s350_s20, %s5776_s22 }
  0x29   : >> { %v5795_v2 = vshrl.u32 %v364_v1, 7  ;;  %v5797_v3 = vand.u32 127, %v364_v1  ;;  %s362_s14 = scalar_lea.vmem %s328_s25, %s5799_s11  ;;  %s4873_s15 = sshll.u32 %s5799_s11, 2 }
  0x2a   : >> { %v5812_v7 = vld [vmem:[%s362_s14] ss:$0 sm:$0xff]  ;;  %s5863_s19 = scalar_lea.vmem %s6748_s1, %s4873_s15 }
  0x2b   : >> { %vm383_vm0 = vcmp.eq.s32.totalorder %v5795_v2, %v5797_v3  ;;  %v366_v4 = vadd.s32 8, %v5795_v2  ;;  %v367_v5 = vadd.s32 16, %v5795_v2  ;;  %v368_v6 = vadd.s32 24, %v5795_v2 }
  0x2c   : >> { %v403_v8 = vsel %vm383_vm0, %v5812_v7, 0  ;;  %v369_v18 = vadd.s32 32, %v5795_v2  ;;  %v370_v19 = vadd.s32 40, %v5795_v2  ;;  %v371_v30 = vadd.s32 48, %v5795_v2 }
  0x2d   : >> { %vm384_vm1 = vcmp.eq.s32.totalorder %v366_v4, %v5797_v3  ;;  %vm385_vm2 = vcmp.eq.s32.totalorder %v367_v5, %v5797_v3  ;;  %vm386_vm3 = vcmp.eq.s32.totalorder %v368_v6, %v5797_v3  ;;  %v420_v9 = vshrl.u32 %v403_v8, 16 }
  0x2e   : >> { %v419_v10 = vand.u32 65535, %v403_v8  ;;  %v404_v11 = vsel %vm384_vm1, %v5812_v7, 0  ;;  %v405_v14 = vsel %vm385_vm2, %v5812_v7, 0  ;;  %v406_v15 = vsel %vm386_vm3, %v5812_v7, 0 }
  0x2f   : >> { %v432_v12 = vshrl.u32 %v404_v11, 16  ;;  %v431_v13 = vand.u32 65535, %v404_v11  ;;  %v422_v16 = vcvt.s32.f32 %v420_v9  ;;  %v444_v22 = vshrl.u32 %v405_v14, 16 }
  0x30   : >> { %v421_v17 = vcvt.s32.f32 %v419_v10  ;;  %v456_v23 = vshrl.u32 %v406_v15, 16  ;;  %vm387_vm4 = vcmp.eq.s32.totalorder %v369_v18, %v5797_v3  ;;  %vm388_vm5 = vcmp.eq.s32.totalorder %v370_v19, %v5797_v3 }
  0x31   : >> { %425 = vadd.xlane.f32.xlu0 %v422_v16  ;;  %v434_v20 = vcvt.s32.f32 %v432_v12  ;;  %v433_v21 = vcvt.s32.f32 %v431_v13  ;;  %v446_v24 = vcvt.s32.f32 %v444_v22  ;;  %v443_v26 = vand.u32 65535, %v405_v14 }
  0x32   : >> { %423 = vadd.xlane.f32.xlu1 %v421_v17  ;;  %v458_v25 = vcvt.s32.f32 %v456_v23  ;;  %v455_v27 = vand.u32 65535, %v406_v15  ;;  %v407_v28 = vsel %vm387_vm4, %v5812_v7, 0  ;;  %v408_v29 = vsel %vm388_vm5, %v5812_v7, 0 }
  0x33   : >> { %v372_v31 = vadd.s32 56, %v5795_v2  ;;  %v445_v32 = vcvt.s32.f32 %v443_v26  ;;  %v468_v34 = vshrl.u32 %v407_v28, 16  ;;  %v480_v35 = vshrl.u32 %v408_v29, 16 }
  0x34   : >> { %v457_v33 = vcvt.s32.f32 %v455_v27  ;;  %vm389_vm6 = vcmp.eq.s32.totalorder %v371_v30, %v5797_v3  ;;  %v467_v38 = vand.u32 65535, %v407_v28  ;;  %v479_v39 = vand.u32 65535, %v408_v29 }
  0x35   : >> { %437 = vadd.xlane.f32.xlu0 %v434_v20  ;;  %vm390_vm7 = vcmp.eq.s32.totalorder %v372_v31, %v5797_v3  ;;  %v470_v36 = vcvt.s32.f32 %v468_v34  ;;  %v482_v37 = vcvt.s32.f32 %v480_v35  ;;  %v409_v40 = vsel %vm389_vm6, %v5812_v7, 0 }
  0x36   : >> { %435 = vadd.xlane.f32.xlu1 %v433_v21  ;;  %v410_v41 = vsel %vm390_vm7, %v5812_v7, 0  ;;  %v373_v42 = vadd.s32 64, %v5795_v2  ;;  %v374_v43 = vadd.s32 72, %v5795_v2  ;;  %v469_v44 = vcvt.s32.f32 %v467_v38 }
  0x37   : >> { %v481_v45 = vcvt.s32.f32 %v479_v39  ;;  %v492_v46 = vshrl.u32 %v409_v40, 16  ;;  %v504_v47 = vshrl.u32 %v410_v41, 16  ;;  %v491_v50 = vand.u32 65535, %v409_v40 }
  0x38   : >> { %vm391_vm8 = vcmp.eq.s32.totalorder %v373_v42, %v5797_v3  ;;  %vm392_vm9 = vcmp.eq.s32.totalorder %v374_v43, %v5797_v3  ;;  %v503_v51 = vand.u32 65535, %v410_v41  ;;  %v375_v54 = vadd.s32 80, %v5795_v2 }
  0x39   : >> { %449 = vadd.xlane.f32.xlu0 %v446_v24  ;;  %v494_v48 = vcvt.s32.f32 %v492_v46  ;;  %v506_v49 = vcvt.s32.f32 %v504_v47  ;;  %v411_v52 = vsel %vm391_vm8, %v5812_v7, 0  ;;  %v412_v53 = vsel %vm392_vm9, %v5812_v7, 0 }
  0x3a   : >> { %461 = vadd.xlane.f32.xlu1 %v458_v25  ;;  %v376_v55 = vadd.s32 88, %v5795_v2  ;;  %v493_v56 = vcvt.s32.f32 %v491_v50  ;;  %v505_v57 = vcvt.s32.f32 %v503_v51  ;;  %v516_v58 = vshrl.u32 %v411_v52, 16 }
  0x3b   : >> { %v528_v59 = vshrl.u32 %v412_v53, 16  ;;  %vm393_vm10 = vcmp.eq.s32.totalorder %v375_v54, %v5797_v3  ;;  %v515_v62 = vand.u32 65535, %v411_v52  ;;  %v527_v63 = vand.u32 65535, %v412_v53 }
  0x3c   : >> { %vm394_vm11 = vcmp.eq.s32.totalorder %v376_v55, %v5797_v3  ;;  %v518_v60 = vcvt.s32.f32 %v516_v58  ;;  %v413_v1 = vsel %vm393_vm10, %v5812_v7, 0  ;;  %v377_v5 = vadd.s32 96, %v5795_v2 }
  0x3d   : >> { %447 = vadd.xlane.f32.xlu0 %v445_v32  ;;  %v530_v61 = vcvt.s32.f32 %v528_v59  ;;  %v414_v4 = vsel %vm394_vm11, %v5812_v7, 0  ;;  %v378_v6 = vadd.s32 104, %v5795_v2  ;;  %v517_v8 = vcvt.s32.f32 %v515_v62 }
  0x3e   : >> { %459 = vadd.xlane.f32.xlu1 %v457_v33  ;;  %v529_v9 = vcvt.s32.f32 %v527_v63  ;;  %v540_v10 = vshrl.u32 %v413_v1, 16  ;;  %v552_v11 = vshrl.u32 %v414_v4, 16  ;;  %vm395_vm12 = vcmp.eq.s32.totalorder %v377_v5, %v5797_v3 }
  0x3f   : >> { %vm396_vm13 = vcmp.eq.s32.totalorder %v378_v6, %v5797_v3  ;;  %v539_v14 = vand.u32 65535, %v413_v1  ;;  %v551_v15 = vand.u32 65535, %v414_v4  ;;  %v415_v16 = vsel %vm395_vm12, %v5812_v7, 0 }
  0x40   : >> { %v542_v12 = vcvt.s32.f32 %v540_v10  ;;  %v554_v13 = vcvt.s32.f32 %v552_v11  ;;  %v416_v17 = vsel %vm396_vm13, %v5812_v7, 0  ;;  %v379_v18 = vadd.s32 112, %v5795_v2 }
  0x41   : >> { %473 = vadd.xlane.f32.xlu0 %v470_v36  ;;  %v380_v19 = vadd.s32 120, %v5795_v2  ;;  %v541_v20 = vcvt.s32.f32 %v539_v14  ;;  %v553_v21 = vcvt.s32.f32 %v551_v15  ;;  %v564_v22 = vshrl.u32 %v415_v16, 16 }
  0x42   : >> { %485 = vadd.xlane.f32.xlu1 %v482_v37  ;;  %v576_v23 = vshrl.u32 %v416_v17, 16  ;;  %vm397_vm14 = vcmp.eq.s32.totalorder %v379_v18, %v5797_v3  ;;  %v563_v26 = vand.u32 65535, %v415_v16  ;;  %v575_v27 = vand.u32 65535, %v416_v17 }
  0x43   : >> { %vm398_vm15 = vcmp.eq.s32.totalorder %v380_v19, %v5797_v3  ;;  %v566_v24 = vcvt.s32.f32 %v564_v22  ;;  %v417_v28 = vsel %vm397_vm14, %v5812_v7, 0  ;;  %v5866_v50 = vadd.s32 128, %v5797_v3 }
  0x44   : >> { %v578_v25 = vcvt.s32.f32 %v576_v23  ;;  %v418_v2 = vsel %vm398_vm15, %v5812_v7, 0  ;;  %v565_v29 = vcvt.s32.f32 %v563_v26  ;;  %v577_v30 = vcvt.s32.f32 %v575_v27 }
  0x45   : >> { %471 = vadd.xlane.f32.xlu0 %v469_v44  ;;  %v588_v31 = vshrl.u32 %v417_v28, 16  ;;  %v600_v32 = vshrl.u32 %v418_v2, 16  ;;  %v587_v35 = vand.u32 65535, %v417_v28  ;;  %v599_v36 = vand.u32 65535, %v418_v2 }
  0x46   : >> { %483 = vadd.xlane.f32.xlu1 %v481_v45  ;;  %v5689_v7 = vmov 0   ;;  %v5869_v53 = vadd.s32 384, %v5797_v3  ;;  %v5690_v1 = vmov 1.0|1.0  }
  0x47   : >> { %v590_v33 = vcvt.s32.f32 %v588_v31  ;;  %v602_v34 = vcvt.s32.f32 %v600_v32  ;;  %v589_v37 = vcvt.s32.f32 %v587_v35  ;;  %v601_v38 = vcvt.s32.f32 %v599_v36  ;;  %882 = vmatprep.mubr.bf16.mxu0 %v5689_v7  ;;  %935 = vmatprep.mubr.bf16.mxu1 %v5689_v7 }
  0x49   : >> { %497 = vadd.xlane.f32.xlu0 %v494_v48 }
  0x4a   : >> { %509 = vadd.xlane.f32.xlu1 %v506_v49 }
  0x4d   : >> { %495 = vadd.xlane.f32.xlu0 %v493_v56 }
  0x4e   : >> { %507 = vadd.xlane.f32.xlu1 %v505_v57  ;;  %v5872_v57 = vadd.s32 256, %v5797_v3 }
  0x51   : >> { %521 = vadd.xlane.f32.xlu0 %v518_v60 }
  0x52   : >> { %533 = vadd.xlane.f32.xlu1 %v530_v61 }
  0x55   : >> { %519 = vadd.xlane.f32.xlu0 %v517_v8 }
  0x56   : >> { %531 = vadd.xlane.f32.xlu1 %v529_v9 }
  0x59   : >> { %545 = vadd.xlane.f32.xlu0 %v542_v12 }
  0x5a   : >> { %557 = vadd.xlane.f32.xlu1 %v554_v13 }
  0x5d   : >> { %543 = vadd.xlane.f32.xlu0 %v541_v20 }
  0x5e   : >> { %555 = vadd.xlane.f32.xlu1 %v553_v21 }
  0x61   : >> { %569 = vadd.xlane.f32.xlu0 %v566_v24 }
  0x62   : >> { %581 = vadd.xlane.f32.xlu1 %v578_v25 }
  0x65   : >> { %567 = vadd.xlane.f32.xlu0 %v565_v29 }
  0x66   : >> { %579 = vadd.xlane.f32.xlu1 %v577_v30 }
  0x69   : >> { %593 = vadd.xlane.f32.xlu0 %v590_v33 }
  0x6a   : >> { %605 = vadd.xlane.f32.xlu1 %v602_v34 }
  0x6d   : >> { %591 = vadd.xlane.f32.xlu0 %v589_v37 }
  0x6e   : >> { %603 = vadd.xlane.f32.xlu1 %v601_v38 }
  0xbe   : >> { %v426_v39 = vpop.xlane.xlu0 %425 }
  0xbf   : >> { %v424_v40 = vpop.xlane.xlu1 %423  ;;  %v428_v41 = vcvt.f32.s32 %v426_v39 }
  0xc0   : >> { %v427_v45 = vcvt.f32.s32 %v424_v40 }
  0xc1   : >> { %v429_v42 = vshll.u32 %v428_v41, 16 }
  0xc2   : >> { %v438_v43 = vpop.xlane.xlu0 %437 }
  0xc3   : >> { %v436_v44 = vpop.xlane.xlu1 %435  ;;  %v440_v46 = vcvt.f32.s32 %v438_v43  ;;  %v430_v47 = vadd.s32 %v429_v42, %v427_v45 }
  0xc4   : >> { %v439_v49 = vcvt.f32.s32 %v436_v44 }
  0xc5   : >> { %v441_v48 = vshll.u32 %v440_v46, 16  ;;  %vm615_vm0 = vcmp.eq.s32.totalorder %v5866_v50, %v430_v47  ;;  %vm617_vm4 = vcmp.eq.s32.totalorder %v5869_v53, %v430_v47  ;;  %vm614_vm5 = vcmp.eq.s32.totalorder %v5797_v3, %v430_v47 }
  0xc6   : >> { %v450_v51 = vpop.xlane.xlu0 %449  ;;  %vm616_vm10 = vcmp.eq.s32.totalorder %v5872_v57, %v430_v47 }
  0xc7   : >> { %v462_v52 = vpop.xlane.xlu1 %461  ;;  %v442_v54 = vadd.s32 %v441_v48, %v439_v49  ;;  %v452_v55 = vcvt.f32.s32 %v450_v51 }
  0xc8   : >> { %v464_v56 = vcvt.f32.s32 %v462_v52 }
  0xc9   : >> { %vm619_vm1 = vcmp.eq.s32.totalorder %v5866_v50, %v442_v54  ;;  %vm621_vm2 = vcmp.eq.s32.totalorder %v5869_v53, %v442_v54  ;;  %vm618_vm6 = vcmp.eq.s32.totalorder %v5797_v3, %v442_v54  ;;  %vm620_vm7 = vcmp.eq.s32.totalorder %v5872_v57, %v442_v54 }
  0xca   : >> { %v448_v58 = vpop.xlane.xlu0 %447  ;;  %vm4941_vm3 = vmpackc.low %vm619_vm1, %vm615_vm0  ;;  %v453_v60 = vshll.u32 %v452_v55, 16  ;;  %v465_v61 = vshll.u32 %v464_v56, 16 }
  0xcb   : >> { %v460_v59 = vpop.xlane.xlu1 %459  ;;  %v451_v62 = vcvt.f32.s32 %v448_v58  ;;  %4942 = vmatprep.subr.msk.bf16.mxu0 %vm4941_vm3, %v5690_v1  ;;  %vm4973_vm8 = vmpackc.low %vm621_vm2, %vm617_vm4 }
  0xcc   : >> { %v463_v63 = vcvt.f32.s32 %v460_v59  ;;  %4974 = vmatprep.subr.msk.bf16.mxu1 %vm4973_vm8, %v5690_v1  ;;  %vm4943_vm9 = vmpackc.low %vm618_vm6, %vm614_vm5 }
  0xcd   : >> { %v454_v4 = vadd.s32 %v453_v60, %v451_v62  ;;  %4944 = vmatpush1.bf16.msk.msra.mxu0 %vm4943_vm9, %v5690_v1  ;;  %vm4975_vm11 = vmpackc.low %vm620_vm7, %vm616_vm10 }
  0xce   : >> { %v466_v5 = vadd.s32 %v465_v61, %v463_v63  ;;  %4976 = vmatpush1.bf16.msk.msra.mxu1 %vm4975_vm11, %v5690_v1  ;;  %v474_v6 = vpop.xlane.xlu0 %473 }
  0xcf   : >> { %v486_v8 = vpop.xlane.xlu1 %485  ;;  %v476_v9 = vcvt.f32.s32 %v474_v6  ;;  %vm623_vm12 = vcmp.eq.s32.totalorder %v5866_v50, %v454_v4  ;;  %vm625_vm15 = vcmp.eq.s32.totalorder %v5869_v53, %v454_v4  ;;  %vm622_vm1 = vcmp.eq.s32.totalorder %v5797_v3, %v454_v4 }
  0xd0   : >> { %v488_v10 = vcvt.f32.s32 %v486_v8  ;;  %vm627_vm13 = vcmp.eq.s32.totalorder %v5866_v50, %v466_v5  ;;  %vm629_vm0 = vcmp.eq.s32.totalorder %v5869_v53, %v466_v5  ;;  %vm626_vm2 = vcmp.eq.s32.totalorder %v5797_v3, %v466_v5 }
  0xd1   : >> { %vm4945_vm14 = vmpackc.low %vm627_vm13, %vm623_vm12  ;;  %vm624_vm4 = vcmp.eq.s32.totalorder %v5872_v57, %v454_v4  ;;  %vm628_vm5 = vcmp.eq.s32.totalorder %v5872_v57, %v466_v5  ;;  %v477_v13 = vshll.u32 %v476_v9, 16 }
  0xd2   : >> { %4946 = vmatprep.subr.msk.bf16.mxu0 %vm4945_vm14, %v5690_v1  ;;  %vm4977_vm3 = vmpackc.low %vm629_vm0, %vm625_vm15  ;;  %v472_v11 = vpop.xlane.xlu0 %471  ;;  %v489_v14 = vshll.u32 %v488_v10, 16 }
  0xd3   : >> { %4978 = vmatprep.subr.msk.bf16.mxu1 %vm4977_vm3, %v5690_v1  ;;  %vm4947_vm6 = vmpackc.low %vm626_vm2, %vm622_vm1  ;;  %v484_v12 = vpop.xlane.xlu1 %483  ;;  %v475_v15 = vcvt.f32.s32 %v472_v11 }
  0xd4   : >> { %4948 = vmatpush1.bf16.msk.msra.mxu0 %vm4947_vm6, %v5690_v1  ;;  %vm4979_vm7 = vmpackc.low %vm628_vm5, %vm624_vm4  ;;  %v487_v16 = vcvt.f32.s32 %v484_v12 }
  0xd5   : >> { %4980 = vmatpush1.bf16.msk.msra.mxu1 %vm4979_vm7, %v5690_v1  ;;  %v478_v17 = vadd.s32 %v477_v13, %v475_v15 }
  0xd6   : >> { %v490_v18 = vadd.s32 %v489_v14, %v487_v16  ;;  %v498_v19 = vpop.xlane.xlu0 %497 }
  0xd7   : >> { %v510_v20 = vpop.xlane.xlu1 %509  ;;  %v500_v21 = vcvt.f32.s32 %v498_v19  ;;  %vm631_vm8 = vcmp.eq.s32.totalorder %v5866_v50, %v478_v17  ;;  %vm633_vm11 = vcmp.eq.s32.totalorder %v5869_v53, %v478_v17  ;;  %vm630_vm13 = vcmp.eq.s32.totalorder %v5797_v3, %v478_v17 }
  0xd8   : >> { %v512_v22 = vcvt.f32.s32 %v510_v20  ;;  %vm635_vm9 = vcmp.eq.s32.totalorder %v5866_v50, %v490_v18  ;;  %vm637_vm12 = vcmp.eq.s32.totalorder %v5869_v53, %v490_v18  ;;  %vm634_vm14 = vcmp.eq.s32.totalorder %v5797_v3, %v490_v18 }
  0xd9   : >> { %vm4949_vm10 = vmpackc.low %vm635_vm9, %vm631_vm8  ;;  %vm632_vm0 = vcmp.eq.s32.totalorder %v5872_v57, %v478_v17  ;;  %vm636_vm1 = vcmp.eq.s32.totalorder %v5872_v57, %v490_v18  ;;  %v501_v25 = vshll.u32 %v500_v21, 16 }
  0xda   : >> { %4950 = vmatprep.subr.msk.bf16.mxu0 %vm4949_vm10, %v5690_v1  ;;  %vm4981_vm15 = vmpackc.low %vm637_vm12, %vm633_vm11  ;;  %v496_v23 = vpop.xlane.xlu0 %495  ;;  %v513_v26 = vshll.u32 %v512_v22, 16 }
  0xdb   : >> { %4982 = vmatprep.subr.msk.bf16.mxu1 %vm4981_vm15, %v5690_v1  ;;  %vm4951_vm2 = vmpackc.low %vm634_vm14, %vm630_vm13  ;;  %v508_v24 = vpop.xlane.xlu1 %507  ;;  %v499_v27 = vcvt.f32.s32 %v496_v23 }
  0xdc   : >> { %4952 = vmatpush1.bf16.msk.msra.mxu0 %vm4951_vm2, %v5690_v1  ;;  %vm4983_vm3 = vmpackc.low %vm636_vm1, %vm632_vm0  ;;  %v511_v28 = vcvt.f32.s32 %v508_v24 }
  0xdd   : >> { %4984 = vmatpush1.bf16.msk.msra.mxu1 %vm4983_vm3, %v5690_v1  ;;  %v502_v2 = vadd.s32 %v501_v25, %v499_v27  ;;  %v956_v25 = vld [vmem:[#allocation2] sm:$0xff] }
  0xde   : >> { %v514_v29 = vadd.s32 %v513_v26, %v511_v28  ;;  %v522_v30 = vpop.xlane.xlu0 %521  ;;  %v958_v28 = vld [vmem:[#allocation2 + $0x10] sm:$0xff] }
  0xdf   : >> { %v534_v31 = vpop.xlane.xlu1 %533  ;;  %v524_v32 = vcvt.f32.s32 %v522_v30  ;;  %vm639_vm4 = vcmp.eq.s32.totalorder %v5866_v50, %v502_v2  ;;  %vm641_vm7 = vcmp.eq.s32.totalorder %v5869_v53, %v502_v2  ;;  %vm638_vm9 = vcmp.eq.s32.totalorder %v5797_v3, %v502_v2 }
  0xe0   : >> { %v536_v33 = vcvt.f32.s32 %v534_v31  ;;  %vm643_vm5 = vcmp.eq.s32.totalorder %v5866_v50, %v514_v29  ;;  %vm645_vm8 = vcmp.eq.s32.totalorder %v5869_v53, %v514_v29  ;;  %vm642_vm10 = vcmp.eq.s32.totalorder %v5797_v3, %v514_v29 }
  0xe1   : >> { %vm4953_vm6 = vmpackc.low %vm643_vm5, %vm639_vm4  ;;  %vm640_vm12 = vcmp.eq.s32.totalorder %v5872_v57, %v502_v2  ;;  %vm644_vm13 = vcmp.eq.s32.totalorder %v5872_v57, %v514_v29  ;;  %v525_v36 = vshll.u32 %v524_v32, 16  ;;  %v959_v32 = vld [vmem:[#allocation2 + $0x18] sm:$0xff] }
  0xe2   : >> { %4954 = vmatprep.subr.msk.bf16.mxu0 %vm4953_vm6, %v5690_v1  ;;  %vm4985_vm11 = vmpackc.low %vm645_vm8, %vm641_vm7  ;;  %v520_v34 = vpop.xlane.xlu0 %519  ;;  %v537_v37 = vshll.u32 %v536_v33, 16 }
  0xe3   : >> { %4986 = vmatprep.subr.msk.bf16.mxu1 %vm4985_vm11, %v5690_v1  ;;  %vm4955_vm14 = vmpackc.low %vm642_vm10, %vm638_vm9  ;;  %v532_v35 = vpop.xlane.xlu1 %531  ;;  %v523_v38 = vcvt.f32.s32 %v520_v34 }
  0xe4   : >> { %4956 = vmatpush1.bf16.msk.msra.mxu0 %vm4955_vm14, %v5690_v1  ;;  %vm4987_vm15 = vmpackc.low %vm644_vm13, %vm640_vm12  ;;  %v535_v39 = vcvt.f32.s32 %v532_v35 }
  0xe5   : >> { %4988 = vmatpush1.bf16.msk.msra.mxu1 %vm4987_vm15, %v5690_v1  ;;  %v526_v40 = vadd.s32 %v525_v36, %v523_v38 }
  0xe6   : >> { %v538_v41 = vadd.s32 %v537_v37, %v535_v39  ;;  %v546_v42 = vpop.xlane.xlu0 %545 }
  0xe7   : >> { %v558_v43 = vpop.xlane.xlu1 %557  ;;  %v548_v44 = vcvt.f32.s32 %v546_v42  ;;  %vm647_vm0 = vcmp.eq.s32.totalorder %v5866_v50, %v526_v40  ;;  %vm649_vm3 = vcmp.eq.s32.totalorder %v5869_v53, %v526_v40  ;;  %vm646_vm5 = vcmp.eq.s32.totalorder %v5797_v3, %v526_v40  ;;  %v960_v42 = vld [vmem:[#allocation2 + $0x20] sm:$0xff] }
  0xe8   : >> { %v560_v45 = vcvt.f32.s32 %v558_v43  ;;  %vm651_vm1 = vcmp.eq.s32.totalorder %v5866_v50, %v538_v41  ;;  %vm653_vm4 = vcmp.eq.s32.totalorder %v5869_v53, %v538_v41  ;;  %vm650_vm6 = vcmp.eq.s32.totalorder %v5797_v3, %v538_v41 }
  0xe9   : >> { %vm4957_vm2 = vmpackc.low %vm651_vm1, %vm647_vm0  ;;  %vm648_vm8 = vcmp.eq.s32.totalorder %v5872_v57, %v526_v40  ;;  %vm652_vm9 = vcmp.eq.s32.totalorder %v5872_v57, %v538_v41  ;;  %v549_v48 = vshll.u32 %v548_v44, 16 }
  0xea   : >> { %4958 = vmatprep.subr.msk.bf16.mxu0 %vm4957_vm2, %v5690_v1  ;;  %vm4989_vm7 = vmpackc.low %vm653_vm4, %vm649_vm3  ;;  %v544_v46 = vpop.xlane.xlu0 %543  ;;  %v561_v49 = vshll.u32 %v560_v45, 16  ;;  %v962_v45 = vld [vmem:[#allocation2 + $0x30] sm:$0xff] }
  0xeb   : >> { %4990 = vmatprep.subr.msk.bf16.mxu1 %vm4989_vm7, %v5690_v1  ;;  %vm4959_vm10 = vmpackc.low %vm650_vm6, %vm646_vm5  ;;  %v556_v47 = vpop.xlane.xlu1 %555  ;;  %v547_v51 = vcvt.f32.s32 %v544_v46 }
  0xec   : >> { %4960 = vmatpush1.bf16.msk.msra.mxu0 %vm4959_vm10, %v5690_v1  ;;  %vm4991_vm11 = vmpackc.low %vm652_vm9, %vm648_vm8  ;;  %v559_v52 = vcvt.f32.s32 %v556_v47  ;;  %v961_v47 = vld [vmem:[#allocation2 + $0x28] sm:$0xff] }
  0xed   : >> { %4992 = vmatpush1.bf16.msk.msra.mxu1 %vm4991_vm11, %v5690_v1  ;;  %v550_v54 = vadd.s32 %v549_v48, %v547_v51 }
  0xee   : >> { %v562_v55 = vadd.s32 %v561_v49, %v559_v52  ;;  %v570_v56 = vpop.xlane.xlu0 %569  ;;  %v963_v52 = vld [vmem:[#allocation2 + $0x38] sm:$0xff] }
  0xef   : >> { %v582_v58 = vpop.xlane.xlu1 %581  ;;  %v572_v59 = vcvt.f32.s32 %v570_v56  ;;  %vm655_vm12 = vcmp.eq.s32.totalorder %v5866_v50, %v550_v54  ;;  %vm657_vm15 = vcmp.eq.s32.totalorder %v5869_v53, %v550_v54  ;;  %vm654_vm1 = vcmp.eq.s32.totalorder %v5797_v3, %v550_v54 }
  0xf0   : >> { %v584_v60 = vcvt.f32.s32 %v582_v58  ;;  %vm659_vm13 = vcmp.eq.s32.totalorder %v5866_v50, %v562_v55  ;;  %vm661_vm0 = vcmp.eq.s32.totalorder %v5869_v53, %v562_v55  ;;  %vm658_vm2 = vcmp.eq.s32.totalorder %v5797_v3, %v562_v55 }
  0xf1   : >> { %vm4961_vm14 = vmpackc.low %vm659_vm13, %vm655_vm12  ;;  %vm656_vm4 = vcmp.eq.s32.totalorder %v5872_v57, %v550_v54  ;;  %vm660_vm5 = vcmp.eq.s32.totalorder %v5872_v57, %v562_v55  ;;  %v573_v63 = vshll.u32 %v572_v59, 16 }
  0xf2   : >> { %4962 = vmatprep.subr.msk.bf16.mxu0 %vm4961_vm14, %v5690_v1  ;;  %vm4993_vm3 = vmpackc.low %vm661_vm0, %vm657_vm15  ;;  %v568_v61 = vpop.xlane.xlu0 %567  ;;  %v585_v4 = vshll.u32 %v584_v60, 16 }
  0xf3   : >> { %4994 = vmatprep.subr.msk.bf16.mxu1 %vm4993_vm3, %v5690_v1  ;;  %vm4963_vm6 = vmpackc.low %vm658_vm2, %vm654_vm1  ;;  %v580_v62 = vpop.xlane.xlu1 %579  ;;  %v571_v5 = vcvt.f32.s32 %v568_v61 }
  0xf4   : >> { %4964 = vmatpush1.bf16.msk.msra.mxu0 %vm4963_vm6, %v5690_v1  ;;  %vm4995_vm7 = vmpackc.low %vm660_vm5, %vm656_vm4  ;;  %v583_v6 = vcvt.f32.s32 %v580_v62 }
  0xf5   : >> { %4996 = vmatpush1.bf16.msk.msra.mxu1 %vm4995_vm7, %v5690_v1  ;;  %v574_v8 = vadd.s32 %v573_v63, %v571_v5 }
  0xf6   : >> { %v586_v9 = vadd.s32 %v585_v4, %v583_v6  ;;  %v594_v10 = vpop.xlane.xlu0 %593 }
  0xf7   : >> { %v606_v11 = vpop.xlane.xlu1 %605  ;;  %v596_v12 = vcvt.f32.s32 %v594_v10  ;;  %vm663_vm8 = vcmp.eq.s32.totalorder %v5866_v50, %v574_v8  ;;  %vm665_vm11 = vcmp.eq.s32.totalorder %v5869_v53, %v574_v8  ;;  %vm662_vm13 = vcmp.eq.s32.totalorder %v5797_v3, %v574_v8 }
  0xf8   : >> { %v608_v13 = vcvt.f32.s32 %v606_v11  ;;  %vm667_vm9 = vcmp.eq.s32.totalorder %v5866_v50, %v586_v9  ;;  %vm669_vm12 = vcmp.eq.s32.totalorder %v5869_v53, %v586_v9  ;;  %vm666_vm14 = vcmp.eq.s32.totalorder %v5797_v3, %v586_v9 }
  0xf9   : >> { %vm4965_vm10 = vmpackc.low %vm667_vm9, %vm663_vm8  ;;  %vm664_vm0 = vcmp.eq.s32.totalorder %v5872_v57, %v574_v8  ;;  %vm668_vm1 = vcmp.eq.s32.totalorder %v5872_v57, %v586_v9  ;;  %v597_v16 = vshll.u32 %v596_v12, 16 }
  0xfa   : >> { %4966 = vmatprep.subr.msk.bf16.mxu0 %vm4965_vm10, %v5690_v1  ;;  %vm4997_vm15 = vmpackc.low %vm669_vm12, %vm665_vm11  ;;  %v592_v14 = vpop.xlane.xlu0 %591  ;;  %v609_v17 = vshll.u32 %v608_v13, 16 }
  0xfb   : >> { %4998 = vmatprep.subr.msk.bf16.mxu1 %vm4997_vm15, %v5690_v1  ;;  %vm4967_vm2 = vmpackc.low %vm666_vm14, %vm662_vm13  ;;  %v604_v15 = vpop.xlane.xlu1 %603  ;;  %v595_v18 = vcvt.f32.s32 %v592_v14 }
  0xfc   : >> { %4968 = vmatpush1.bf16.msk.msra.mxu0 %vm4967_vm2, %v5690_v1  ;;  %vm4999_vm3 = vmpackc.low %vm668_vm1, %vm664_vm0  ;;  %v607_v19 = vcvt.f32.s32 %v604_v15 }
  0xfd   : >> { %5000 = vmatpush1.bf16.msk.msra.mxu1 %vm4999_vm3, %v5690_v1  ;;  %v598_v20 = vadd.s32 %v597_v16, %v595_v18 }
  0xfe   : >> { %v610_v21 = vadd.s32 %v609_v17, %v607_v19 }
  0xff   : >> { %vm671_vm4 = vcmp.eq.s32.totalorder %v5866_v50, %v598_v20  ;;  %vm673_vm6 = vcmp.eq.s32.totalorder %v5869_v53, %v598_v20  ;;  %vm670_vm9 = vcmp.eq.s32.totalorder %v5797_v3, %v598_v20  ;;  %vm672_vm11 = vcmp.eq.s32.totalorder %v5872_v57, %v598_v20 }
 0x100   : >> { %vm675_vm5 = vcmp.eq.s32.totalorder %v5866_v50, %v610_v21  ;;  %vm677_vm7 = vcmp.eq.s32.totalorder %v5869_v53, %v610_v21  ;;  %vm674_vm10 = vcmp.eq.s32.totalorder %v5797_v3, %v610_v21  ;;  %vm676_vm12 = vcmp.eq.s32.totalorder %v5872_v57, %v610_v21  ;;  %v5617_v50 = vld [vmem:[%s5863_s19] sm:$0xff]   ;;  %v5618_v3 = vld [vmem:[%s5863_s19 + $0x8] sm:$0xff]  }
 0x101   : >> { %vm4969_vm8 = vmpackc.low %vm675_vm5, %vm671_vm4 }
 0x102   : >> { %4970 = vmatprep.subr.msk.bf16.mxu0 %vm4969_vm8, %v5690_v1  ;;  %vm5001_vm13 = vmpackc.low %vm677_vm7, %vm673_vm6 }
 0x103   : >> { %5002 = vmatprep.subr.msk.bf16.mxu1 %vm5001_vm13, %v5690_v1  ;;  %vm4971_vm14 = vmpackc.low %vm674_vm10, %vm670_vm9 }
 0x104   : >> { %4972 = vmatpush1.bf16.msk.msra.mxu0 %vm4971_vm14, %v5690_v1  ;;  %vm5003_vm15 = vmpackc.low %vm676_vm12, %vm672_vm11 }
 0x105   : >> { %5004 = vmatpush1.bf16.msk.msra.mxu1 %vm5003_vm15, %v5690_v1  ;;  %v957_v1 = vld [vmem:[#allocation2 + $0x8] sm:$0xff] }
 0x107   : >> { %883 = vmatmul.mubr.bf16.vlgmr.msra.gmra.mrb[0].mxu0 %v5617_v50 }
 0x108   : >> { %936 = vmatmul.mubr.bf16.vlgmr.msra.gmra.mrb[0].mxu1 %v5617_v50  ;;  %892 = vmatprep.mubr.bf16.mxu0 %v5689_v7 }
 0x109   : >> { %945 = vmatprep.mubr.bf16.mxu1 %v5689_v7 }
 0x10f   : >> { %893 = vmatmul.mubr.bf16.gmra.mrb[4].mxu0 %v5618_v3 }
 0x110   : >> { %946 = vmatmul.mubr.bf16.gmra.mrb[4].mxu1 %v5618_v3 }
 0x1da   : >> { %v884_v53 = vpop.f32.mrb[0].mxu0 }
 0x1db   : >> { %v937_v57 = vpop.f32.mrb[0].mxu1  ;;  %v886_v22 = vpop.f32.mrb[1].mxu0 }
 0x1dc   : >> { %v939_v23 = vpop.f32.mrb[1].mxu1  ;;  %v888_v24 = vpop.f32.mrb[2].mxu0 }
 0x1dd   : >> { %v964_v26 = vpack.c.bf16 %v888_v24, %v884_v53  ;;  %v941_v27 = vpop.f32.mrb[2].mxu1  ;;  %v890_v2 = vpop.f32.mrb[3].mxu0 }
 0x1de   : >> { %v966_v29 = vpack.c.bf16 %v941_v27, %v937_v57  ;;  %v965_v30 = vpack.c.bf16 %v890_v2, %v886_v22  ;;  %v943_v31 = vpop.f32.mrb[3].mxu1 }
 0x1df   : >> { %v972_v33 = vadd.bf16 %v964_v26, %v956_v25  ;;  %v967_v7 = vpack.c.bf16 %v943_v31, %v939_v23 }
 0x1e0   : >> { %v974_v34 = vadd.bf16 %v966_v29, %v958_v28  ;;  %v973_v35 = vadd.bf16 %v965_v30, %v957_v1 }
 0x1e1   : >> { %980 = vst [vmem:[#allocation2] sm:$0xff] %v972_v33  ;;  %v975_v36 = vadd.bf16 %v967_v7, %v959_v32 }
 0x1e2   : >> { %982 = vst [vmem:[#allocation2 + $0x10] sm:$0xff] %v974_v34  ;;  %981 = vst [vmem:[#allocation2 + $0x8] sm:$0xff] %v973_v35  ;;  %v894_v37 = vpop.f32.mrb[4].mxu0 }
 0x1e3   : >> { %983 = vst [vmem:[#allocation2 + $0x18] sm:$0xff] %v975_v36  ;;  %v947_v38 = vpop.f32.mrb[4].mxu1  ;;  %v896_v39 = vpop.f32.mrb[5].mxu0 }
 0x1e4   : >> { %v949_v40 = vpop.f32.mrb[5].mxu1  ;;  %v898_v41 = vpop.f32.mrb[6].mxu0 }
 0x1e5   : >> { %v968_v43 = vpack.c.bf16 %v898_v41, %v894_v37  ;;  %v951_v44 = vpop.f32.mrb[6].mxu1  ;;  %v900_v46 = vpop.f32.mrb[7].mxu0  ;;  %352 = sbr.rel (!%p349_p10) target bundleno = 39 (0x27), region = 111 }
 0x1e6   : >> { %v970_v48 = vpack.c.bf16 %v951_v44, %v947_v38  ;;  %v969_v49 = vpack.c.bf16 %v900_v46, %v896_v39  ;;  %v953_v51 = vpop.f32.mrb[7].mxu1 }
 0x1e7   : >> { %v976_v54 = vadd.bf16 %v968_v43, %v960_v42  ;;  %v971_v55 = vpack.c.bf16 %v953_v51, %v949_v40 }
 0x1e8   : >> { %v978_v56 = vadd.bf16 %v970_v48, %v962_v45  ;;  %v977_v58 = vadd.bf16 %v969_v49, %v961_v47 }
 0x1e9   : >> { %984 = vst [vmem:[#allocation2 + $0x20] sm:$0xff] %v976_v54  ;;  %v979_v59 = vadd.bf16 %v971_v55, %v963_v52 }
 0x1ea   : >> { %986 = vst [vmem:[#allocation2 + $0x30] sm:$0xff] %v978_v56  ;;  %985 = vst [vmem:[#allocation2 + $0x28] sm:$0xff] %v977_v58 }
 0x1eb   : >> { %987 = vst [vmem:[#allocation2 + $0x38] sm:$0xff] %v979_v59 }
 0x1ec PF: > { %v5978_v60 = vld [vmem:[#allocation2 + $0x8] sm:$0xff]  ;;  %v5980_v61 = vld [vmem:[#allocation2] sm:$0xff]  ;;  %1048 = vmatprep.mubr.bf16.mxu0 %v5688_v0  ;;  %5620 = vset.pattern.permute.xlu1 %v5688_v0  ;;  %s5691_s21 = smov 126   ;;  %v5988_v62 = vld [vmem:[#allocation2 + $0x10] sm:$0xff]  ;;  %vm1009_vm0 = vcmask 261120   ;;  %s5692_s26 = smov 124  }
 0x1ed   : > { %1163 = vrot.lane.b32.xlu0 %v5978_v60, %s5691_s21  ;;  %1161 = vrot.lane.b32.xlu1 %v5980_v61, %s5691_s21  ;;  %v5621_v5 = vld [vmem:[%s6751_s4] sm:$0xff]   ;;  %v6004_v6 = vld [vmem:[%s6751_s4 + $0x10] sm:$0xff]   ;;  %v1138_v10 = vld [vmem:[#allocation2 + $0x18] sm:$0xff]  ;;  %s5693_s27 = smov 88   ;;  %s5694_s28 = smov 86   ;;  %vm1177_vm1 = vcmask 1031168  }
 0x1ee   : > { %1016 = vmatprep.subr.bf16.mxu0 %v5978_v60  ;;  %5619 = vset.pattern.permute.xlu0 %v5688_v0  ;;  %v5622_v9 = vld [vmem:[%s6751_s4 + $0x8] sm:$0xff]   ;;  %s5695_s30 = smov 84   ;;  %s5696_s11 = smov 48   ;;  %vm1381_vm2 = vcmask 1014784   ;;  %v2774_v50 = vld [vmem:[%s6752_s5] sm:$0xff]  ;;  %v5624_v28 = vld [vmem:[%s6751_s4 + $0x18] sm:$0xff]  }
 0x1ef   : > { %1017 = vmatpush1.bf16.msra.mxu0 %v5980_v61  ;;  %5263 = vmatprep.mubr.msk.bf16.mxu1 %vm1009_vm0, %v6004_v6  ;;  %s5697_s12 = smov 46   ;;  %s5698_s13 = smov 44   ;;  %v2775_v57 = vld [vmem:[%s6752_s5 + $0x8] sm:$0xff]  ;;  %v2810_v26 = vld [vmem:[%s6753_s6] sm:$0xff]  ;;  %v2777_v2 = vld [vmem:[%s6752_s5 + $0x18] sm:$0xff]  ;;  %vm1585_vm3 = vcmask 719872  }
 0x1f0   : > { %v6010_v8 = vld [vmem:[#allocation2 + $0x20] sm:$0xff]  ;;  %v2811_v23 = vld [vmem:[%s6753_s6 + $0x8] sm:$0xff]  ;;  %v2776_v30 = vld [vmem:[%s6752_s5 + $0x10] sm:$0xff]  ;;  %vm1789_vm4 = vcmask 703488   ;;  %vm1993_vm5 = vcmask 687104   ;;  %vm2197_vm6 = vcmask 392192  }
 0x1f1   : > { %v5990_v63 = vld [vmem:[#allocation2 + $0x28] sm:$0xff]  ;;  %v5995_v4 = vld [vmem:[#allocation2 + $0x30] sm:$0xff]  ;;  %1165 = vrot.lane.b32.xlu0 %v5988_v62, %s5691_s21  ;;  %v2813_v33 = vld [vmem:[%s6753_s6 + $0x18] sm:$0xff]  ;;  %vm2401_vm7 = vcmask 375808   ;;  %vm2605_vm8 = vcmask 359424   ;;  %s5699_s19 = smov 42  }
 0x1f2   : > { %1018 = vmatprep.subr.bf16.mxu0 %v5990_v63  ;;  %1171 = vrot.lane.b32.xlu1 %v5990_v63, %s5691_s21  ;;  %v6051_v11 = vld [vmem:[#allocation2 + $0x38] sm:$0xff]  ;;  %v2812_v35 = vld [vmem:[%s6753_s6 + $0x10] sm:$0xff]  ;;  %v5625_v37 = vld [vmem:[%s6751_s4 + $0x20] sm:$0xff]   ;;  %vm2910_vm9 = vcmask 343040   ;;  %vm2923_vm10 = vcmask 1047888  }
 0x1f3   : > { %1019 = vmatpush1.bf16.msra.mxu0 %v6010_v8  ;;  %v5626_v47 = vld [vmem:[%s6751_s4 + $0x28] sm:$0xff]   ;;  %v5627_v59 = vld [vmem:[%s6751_s4 + $0x30] sm:$0xff]  }
 0x1f4   : > { %5251 = vmatprep.subr.bf16.mxu0 %v5988_v62 }
 0x1f5   : > { %1173 = vrot.lane.b32.xlu0 %v5995_v4, %s5691_s21 }
 0x1f6   : > { %1169 = vrot.lane.b32.xlu1 %v6010_v8, %s5691_s21  ;;  %5007 = vmatmul.mubr.msk.bf16.vlgmr.msra.gmra.mrb[0].mxu0 %vm1009_vm0, %v5621_v5 }
 0x1f7   : > { %1058 = vmatprep.mubr.bf16.mxu0 %v5688_v0  ;;  %5252 = vmatpush3.bf16.msra.mxu0 %v5988_v62 }
 0x1f8   : > { %5253 = vmatprep.subr.bf16.mxu0 %v5995_v4 }
 0x1f9   : > { %1367 = vrot.lane.b32.xlu0 %v5978_v60, %s5692_s26 }
 0x1fa   : > { %1369 = vrot.lane.b32.xlu1 %v5988_v62, %s5692_s26 }
 0x1fb   : > { %5254 = vmatpush3.bf16.msra.mxu0 %v5995_v4 }
 0x1fd   : > { %1365 = vrot.lane.b32.xlu0 %v5980_v61, %s5692_s26 }
 0x1fe   : > { %1375 = vrot.lane.b32.xlu1 %v5990_v63, %s5692_s26  ;;  %5008 = vmatmul.mubr.msk.bf16.gmra.mrb[4].mxu0 %vm1009_vm0, %v5622_v9 }
 0x1ff   : > { %5255 = vmatprep.mubr.msk.bf16.mxu0 %vm1009_vm0, %v5621_v5 }
 0x201   : > { %1377 = vrot.lane.b32.xlu0 %v5995_v4, %s5692_s26 }
 0x202   : > { %1373 = vrot.lane.b32.xlu1 %v6010_v8, %s5692_s26 }
 0x205   : > { %1167 = vrot.lane.b32.xlu0 %v1138_v10, %s5691_s21 }
 0x206   : > { %1571 = vrot.lane.b32.xlu1 %v5978_v60, %s5693_s27  ;;  %5256 = vmatmul.mubr.msk.bf16.vlgmr.msra.gmra.mrb[8].mxu0 %vm1009_vm0, %v5622_v9 }
 0x207   : > { %1228 = vmatprep.mubr.bf16.mxu0 %v5688_v0 }
 0x209   : > { %1573 = vrot.lane.b32.xlu0 %v5988_v62, %s5693_s27 }
 0x20a   : > { %1569 = vrot.lane.b32.xlu1 %v5980_v61, %s5693_s27 }
 0x20d   : > { %1175 = vrot.lane.b32.xlu0 %v6051_v11, %s5691_s21 }
 0x20e   : > { %1579 = vrot.lane.b32.xlu1 %v5990_v63, %s5693_s27 }
 0x211   : > { %1581 = vrot.lane.b32.xlu0 %v5995_v4, %s5693_s27 }
 0x212   : > { %1577 = vrot.lane.b32.xlu1 %v6010_v8, %s5693_s27 }
 0x215   : > { %1371 = vrot.lane.b32.xlu0 %v1138_v10, %s5692_s26 }
 0x216   : > { %1379 = vrot.lane.b32.xlu1 %v6051_v11, %s5692_s26 }
 0x219   : > { %1775 = vrot.lane.b32.xlu0 %v5978_v60, %s5694_s28 }
 0x21a   : > { %1777 = vrot.lane.b32.xlu1 %v5988_v62, %s5694_s28 }
 0x21d   : > { %1773 = vrot.lane.b32.xlu0 %v5980_v61, %s5694_s28 }
 0x21e   : > { %1783 = vrot.lane.b32.xlu1 %v5990_v63, %s5694_s28 }
 0x221   : > { %1785 = vrot.lane.b32.xlu0 %v5995_v4, %s5694_s28 }
 0x222   : > { %1781 = vrot.lane.b32.xlu1 %v6010_v8, %s5694_s28 }
 0x225   : > { %1575 = vrot.lane.b32.xlu0 %v1138_v10, %s5693_s27 }
 0x226   : > { %1583 = vrot.lane.b32.xlu1 %v6051_v11, %s5693_s27 }
 0x229   : > { %1979 = vrot.lane.b32.xlu0 %v5978_v60, %s5695_s30 }
 0x22a   : > { %1981 = vrot.lane.b32.xlu1 %v5988_v62, %s5695_s30 }
 0x22d   : > { %1977 = vrot.lane.b32.xlu0 %v5980_v61, %s5695_s30 }
 0x22e   : > { %1779 = vrot.lane.b32.xlu1 %v1138_v10, %s5694_s28 }
 0x231   : > { %1987 = vrot.lane.b32.xlu0 %v5990_v63, %s5695_s30 }
 0x232   : > { %1989 = vrot.lane.b32.xlu1 %v5995_v4, %s5695_s30 }
 0x235   : > { %1985 = vrot.lane.b32.xlu0 %v6010_v8, %s5695_s30 }
 0x236   : > { %1787 = vrot.lane.b32.xlu1 %v6051_v11, %s5694_s28 }
 0x239   : > { %1983 = vrot.lane.b32.xlu0 %v1138_v10, %s5695_s30 }
 0x23a   : > { %2183 = vrot.lane.b32.xlu1 %v5978_v60, %s5696_s11 }
 0x23d   : > { %2185 = vrot.lane.b32.xlu0 %v5988_v62, %s5696_s11 }
 0x23e   : > { %2181 = vrot.lane.b32.xlu1 %v5980_v61, %s5696_s11 }
 0x241   : > { %1991 = vrot.lane.b32.xlu0 %v6051_v11, %s5695_s30 }
 0x242   : > { %2191 = vrot.lane.b32.xlu1 %v5990_v63, %s5696_s11 }
 0x245   : > { %2193 = vrot.lane.b32.xlu0 %v5995_v4, %s5696_s11 }
 0x246   : > { %2189 = vrot.lane.b32.xlu1 %v6010_v8, %s5696_s11 }
 0x249   : > { %2187 = vrot.lane.b32.xlu0 %v1138_v10, %s5696_s11 }
 0x24a   : > { %2195 = vrot.lane.b32.xlu1 %v6051_v11, %s5696_s11 }
 0x24d   : > { %2387 = vrot.lane.b32.xlu0 %v5978_v60, %s5697_s12 }
 0x24e   : > { %2389 = vrot.lane.b32.xlu1 %v5988_v62, %s5697_s12 }
 0x251   : > { %2385 = vrot.lane.b32.xlu0 %v5980_v61, %s5697_s12 }
 0x252   : > { %2395 = vrot.lane.b32.xlu1 %v5990_v63, %s5697_s12 }
 0x255   : > { %2397 = vrot.lane.b32.xlu0 %v5995_v4, %s5697_s12 }
 0x256   : > { %2393 = vrot.lane.b32.xlu1 %v6010_v8, %s5697_s12 }
 0x259   : > { %2391 = vrot.lane.b32.xlu0 %v1138_v10, %s5697_s12 }
 0x25a   : > { %2399 = vrot.lane.b32.xlu1 %v6051_v11, %s5697_s12 }
 0x25d   : > { %2591 = vrot.lane.b32.xlu0 %v5978_v60, %s5698_s13 }
 0x25e   : > { %2593 = vrot.lane.b32.xlu1 %v5988_v62, %s5698_s13 }
 0x25f   : > { %v1164_v12 = vpop.permute.xlu0 %1163  ;;  %v1162_v13 = vpop.permute.xlu1 %1161 }
 0x260   : > { %v1178_v17 = vsel %vm1177_vm1, %v1162_v13, %v1164_v12 }
 0x261   : > { %2589 = vrot.lane.b32.xlu0 %v5980_v61, %s5698_s13 }
 0x262   : > { %2595 = vrot.lane.b32.xlu1 %v1138_v10, %s5698_s13 }
 0x263   : > { %v1166_v14 = vpop.permute.xlu0 %1165 }
 0x264   : > { %v1172_v15 = vpop.permute.xlu1 %1171  ;;  %v1179_v16 = vsel %vm1177_vm1, %v1164_v12, %v1166_v14 }
 0x265   : > { %2599 = vrot.lane.b32.xlu0 %v5990_v63, %s5698_s13  ;;  %1196 = vmatprep.subr.bf16.mxu0 %v1179_v16  ;;  %v5629_v16 = vld [vmem:[%s6751_s4 + $0x40] sm:$0xff]  }
 0x266   : > { %2601 = vrot.lane.b32.xlu1 %v5995_v4, %s5698_s13  ;;  %1197 = vmatpush1.bf16.msra.mxu0 %v1178_v17 }
 0x267   : > { %v1174_v18 = vpop.permute.xlu0 %1173 }
 0x268   : > { %v1170_v19 = vpop.permute.xlu1 %1169  ;;  %v1182_v21 = vsel %vm1177_vm1, %v1172_v15, %v1174_v18 }
 0x269   : > { %v1181_v20 = vsel %vm1177_vm1, %v1170_v19, %v1172_v15  ;;  %2597 = vrot.lane.b32.xlu0 %v6010_v8, %s5698_s13  ;;  %1198 = vmatprep.subr.bf16.mxu0 %v1182_v21 }
 0x26a   : > { %2603 = vrot.lane.b32.xlu1 %v6051_v11, %s5698_s13  ;;  %1199 = vmatpush1.bf16.msra.mxu0 %v1181_v20 }
 0x26b   : > { %v1368_v3 = vpop.permute.xlu0 %1367 }
 0x26c   : > { %v6149_v53 = vpop.permute.xlu1 %1369 }
 0x26d   : > { %v1383_v22 = vsel %vm1381_vm2, %v1368_v3, %v6149_v53  ;;  %2780 = vperm.xlu0 %5619, %v2774_v50   ;;  %5017 = vmatmul.mubr.msk.bf16.vlgmr.msra.gmra.mrb[0].mxu0 %vm1009_vm0, %v6004_v6  ;;  %v5628_v6 = vld [vmem:[%s6751_s4 + $0x38] sm:$0xff]  }
 0x26e   : > { %1400 = vmatprep.subr.bf16.mxu0 %v1383_v22  ;;  %2785 = vperm.xlu1 %5620, %v2775_v57  }
 0x26f   : > { %v1366_v24 = vpop.permute.xlu0 %1365  ;;  %1238 = vmatprep.mubr.bf16.mxu0 %v5688_v0 }
 0x270   : > { %v1376_v25 = vpop.permute.xlu1 %1375  ;;  %v1382_v27 = vsel %vm1381_vm2, %v1366_v24, %v1368_v3 }
 0x271   : > { %1401 = vmatpush1.bf16.msra.mxu0 %v1382_v27  ;;  %2821 = vperm.xlu0 %5619, %v2811_v23  }
 0x272   : > { %2816 = vperm.xlu1 %5620, %v2810_v26  }
 0x273   : > { %v1378_v1 = vpop.permute.xlu0 %1377 }
 0x274   : > { %v1374_v29 = vpop.permute.xlu1 %1373  ;;  %v1386_v32 = vsel %vm1381_vm2, %v1376_v25, %v1378_v1 }
 0x275   : > { %v1385_v31 = vsel %vm1381_vm2, %v1374_v29, %v1376_v25  ;;  %1402 = vmatprep.subr.bf16.mxu0 %v1386_v32  ;;  %2795 = vperm.xlu0 %5619, %v2777_v2  }
 0x276   : > { %5018 = vmatmul.mubr.msk.bf16.gmra.mrb[4].mxu0 %vm1009_vm0, %v5624_v28  ;;  %2790 = vperm.xlu1 %5620, %v2776_v30  }
 0x277   : > { %1403 = vmatpush1.bf16.msra.mxu0 %v1385_v31  ;;  %v1168_v7 = vpop.permute.xlu0 %1167  ;;  %1432 = vmatprep.mubr.bf16.mxu0 %v5688_v0 }
 0x278   : > { %v1572_v34 = vpop.permute.xlu1 %1571  ;;  %v1180_v36 = vsel %vm1177_vm1, %v1166_v14, %v1168_v7  ;;  %v5632_v7 = vld [vmem:[%s6751_s4 + $0x58] sm:$0xff]  }
 0x279   : > { %5259 = vmatprep.subr.bf16.mxu1 %v1180_v36  ;;  %2831 = vperm.xlu0 %5619, %v2813_v33  }
 0x27a   : > { %5260 = vmatpush3.bf16.msra.mxu1 %v1180_v36  ;;  %2826 = vperm.xlu1 %5620, %v2812_v35  }
 0x27b   : > { %v1574_v38 = vpop.permute.xlu0 %1573 }
 0x27c   : > { %v1570_v39 = vpop.permute.xlu1 %1569  ;;  %v1587_v41 = vsel %vm1585_vm3, %v1572_v34, %v1574_v38 }
 0x27d   : > { %v1586_v40 = vsel %vm1585_vm3, %v1570_v39, %v1572_v34  ;;  %1604 = vmatprep.subr.bf16.mxu0 %v1587_v41  ;;  %v5633_v39 = vld [vmem:[%s6751_s4 + $0x60] sm:$0xff]  }
 0x27e   : > { %5027 = vmatmul.mubr.msk.bf16.vlgmr.msra.gmra.mrb[0].mxu0 %vm1009_vm0, %v5625_v37 }
 0x27f   : > { %1605 = vmatpush1.bf16.msra.mxu0 %v1586_v40  ;;  %v1176_v42 = vpop.permute.xlu0 %1175  ;;  %1442 = vmatprep.mubr.bf16.mxu0 %v5688_v0 }
 0x280   : > { %v1580_v43 = vpop.permute.xlu1 %1579  ;;  %v1183_v44 = vsel %vm1177_vm1, %v1174_v18, %v1176_v42 }
 0x281   : > { %5261 = vmatprep.subr.bf16.mxu1 %v1183_v44 }
 0x282   : > { %5262 = vmatpush3.bf16.msra.mxu1 %v1183_v44 }
 0x283   : > { %v1582_v45 = vpop.permute.xlu0 %1581 }
 0x284   : > { %v1578_v46 = vpop.permute.xlu1 %1577  ;;  %v1590_v49 = vsel %vm1585_vm3, %v1580_v43, %v1582_v45 }
 0x285   : > { %v1589_v48 = vsel %vm1585_vm3, %v1578_v46, %v1580_v43  ;;  %1606 = vmatprep.subr.bf16.mxu0 %v1590_v49  ;;  %5264 = vmatmul.mubr.msk.bf16.vlgmr.msra.gmra.mrb[0].mxu1 %vm1009_vm0, %v5624_v28  ;;  %v5631_v28 = vld [vmem:[%s6751_s4 + $0x50] sm:$0xff]  }
 0x286   : > { %1607 = vmatpush1.bf16.msra.mxu0 %v1589_v48  ;;  %5271 = vmatprep.mubr.msk.bf16.mxu1 %vm1009_vm0, %v5625_v37 }
 0x287   : > { %v1372_v51 = vpop.permute.xlu0 %1371  ;;  %5028 = vmatmul.mubr.msk.bf16.gmra.mrb[4].mxu0 %vm1009_vm0, %v5626_v47 }
 0x288   : > { %v1380_v52 = vpop.permute.xlu1 %1379  ;;  %v1384_v54 = vsel %vm1381_vm2, %v6149_v53, %v1372_v51  ;;  %1636 = vmatprep.mubr.bf16.mxu0 %v5688_v0  ;;  %v5630_v53 = vld [vmem:[%s6751_s4 + $0x48] sm:$0xff]  }
 0x289   : > { %5267 = vmatprep.subr.bf16.mxu1 %v1384_v54  ;;  %v1387_v55 = vsel %vm1381_vm2, %v1378_v1, %v1380_v52  ;;  %v5635_v52 = vld [vmem:[%s6751_s4 + $0x70] sm:$0xff]  }
 0x28a   : > { %5268 = vmatpush3.bf16.msra.mxu1 %v1384_v54 }
 0x28b   : > { %v1776_v56 = vpop.permute.xlu0 %1775  ;;  %5269 = vmatprep.subr.bf16.mxu1 %v1387_v55 }
 0x28c   : > { %v1778_v58 = vpop.permute.xlu1 %1777 }
 0x28d   : > { %v1791_v60 = vsel %vm1789_vm4, %v1776_v56, %v1778_v58 }
 0x28e   : > { %1808 = vmatprep.subr.bf16.mxu0 %v1791_v60  ;;  %5270 = vmatpush3.bf16.msra.mxu1 %v1387_v55 }
 0x28f   : > { %v1774_v61 = vpop.permute.xlu0 %1773  ;;  %5037 = vmatmul.mubr.msk.bf16.vlgmr.msra.gmra.mrb[0].mxu0 %vm1009_vm0, %v5627_v59 }
 0x290   : > { %v1784_v62 = vpop.permute.xlu1 %1783  ;;  %v1790_v63 = vsel %vm1789_vm4, %v1774_v61, %v1776_v56  ;;  %1646 = vmatprep.mubr.bf16.mxu0 %v5688_v0 }
 0x291   : > { %1809 = vmatpush1.bf16.msra.mxu0 %v1790_v63  ;;  %5272 = vmatmul.mubr.msk.bf16.vlgmr.msra.gmra.mrb[0].mxu1 %vm1009_vm0, %v5626_v47  ;;  %v5634_v47 = vld [vmem:[%s6751_s4 + $0x68] sm:$0xff]  }
 0x292   : > { %5279 = vmatprep.mubr.msk.bf16.mxu1 %vm1009_vm0, %v5627_v59 }
 0x293   : > { %v1786_v4 = vpop.permute.xlu0 %1785 }
 0x294   : > { %v1782_v5 = vpop.permute.xlu1 %1781  ;;  %v1794_v9 = vsel %vm1789_vm4, %v1784_v62, %v1786_v4 }
 0x295   : > { %v1793_v8 = vsel %vm1789_vm4, %v1782_v5, %v1784_v62  ;;  %1810 = vmatprep.subr.bf16.mxu0 %v1794_v9 }
 0x296   : > { %1811 = vmatpush1.bf16.msra.mxu0 %v1793_v8  ;;  %v5637_v8 = vld [vmem:[%s6751_s4 + $0x80] sm:$0xff]  }
 0x297   : > { %v1576_v10 = vpop.permute.xlu0 %1575  ;;  %5038 = vmatmul.mubr.msk.bf16.gmra.mrb[4].mxu0 %vm1009_vm0, %v5628_v6 }
 0x298   : > { %v1584_v11 = vpop.permute.xlu1 %1583  ;;  %v1588_v12 = vsel %vm1585_vm3, %v1574_v38, %v1576_v10  ;;  %1840 = vmatprep.mubr.bf16.mxu0 %v5688_v0 }
 0x299   : > { %5275 = vmatprep.subr.bf16.mxu1 %v1588_v12  ;;  %v1591_v13 = vsel %vm1585_vm3, %v1582_v45, %v1584_v11 }
 0x29a   : > { %5276 = vmatpush3.bf16.msra.mxu1 %v1588_v12 }
 0x29b   : > { %v1980_v14 = vpop.permute.xlu0 %1979  ;;  %5277 = vmatprep.subr.bf16.mxu1 %v1591_v13 }
 0x29c   : > { %v1982_v15 = vpop.permute.xlu1 %1981 }
 0x29d   : > { %v1995_v17 = vsel %vm1993_vm5, %v1980_v14, %v1982_v15 }
 0x29e   : > { %2012 = vmatprep.subr.bf16.mxu0 %v1995_v17  ;;  %5278 = vmatpush3.bf16.msra.mxu1 %v1591_v13 }
 0x29f   : > { %v1978_v18 = vpop.permute.xlu0 %1977  ;;  %5047 = vmatmul.mubr.msk.bf16.vlgmr.msra.gmra.mrb[0].mxu0 %vm1009_vm0, %v5629_v16 }
 0x2a0   : > { %v1780_v19 = vpop.permute.xlu1 %1779  ;;  %v1994_v20 = vsel %vm1993_vm5, %v1978_v18, %v1980_v14  ;;  %1850 = vmatprep.mubr.bf16.mxu0 %v5688_v0 }
 0x2a1   : > { %v1792_v21 = vsel %vm1789_vm4, %v1778_v58, %v1780_v19  ;;  %2013 = vmatpush1.bf16.msra.mxu0 %v1994_v20  ;;  %5280 = vmatmul.mubr.msk.bf16.vlgmr.msra.gmra.mrb[0].mxu1 %vm1009_vm0, %v5628_v6  ;;  %v5636_v6 = vld [vmem:[%s6751_s4 + $0x78] sm:$0xff]  }
 0x2a2   : > { %5283 = vmatprep.subr.bf16.mxu1 %v1792_v21  ;;  %5287 = vmatprep.mubr.msk.bf16.mxu1 %vm1009_vm0, %v5629_v16 }
 0x2a3   : > { %5284 = vmatpush3.bf16.msra.mxu1 %v1792_v21  ;;  %v1988_v50 = vpop.permute.xlu0 %1987 }
 0x2a4   : > { %v1990_v3 = vpop.permute.xlu1 %1989 }
 0x2a5   : > { %v1998_v57 = vsel %vm1993_vm5, %v1988_v50, %v1990_v3 }
 0x2a6   : > { %2014 = vmatprep.subr.bf16.mxu0 %v1998_v57 }
 0x2a7   : > { %v1986_v22 = vpop.permute.xlu0 %1985  ;;  %5048 = vmatmul.mubr.msk.bf16.gmra.mrb[4].mxu0 %vm1009_vm0, %v5630_v53 }
 0x2a8   : > { %v1788_v23 = vpop.permute.xlu1 %1787  ;;  %v1997_v24 = vsel %vm1993_vm5, %v1986_v22, %v1988_v50  ;;  %2044 = vmatprep.mubr.bf16.mxu0 %v5688_v0 }
 0x2a9   : > { %v1795_v25 = vsel %vm1789_vm4, %v1786_v4, %v1788_v23  ;;  %2015 = vmatpush1.bf16.msra.mxu0 %v1997_v24  ;;  %v2859_v23 = vlaneseq }
 0x2aa   : > { %5285 = vmatprep.subr.bf16.mxu1 %v1795_v25 }
 0x2ab   : > { %5286 = vmatpush3.bf16.msra.mxu1 %v1795_v25  ;;  %v1984_v26 = vpop.permute.xlu0 %1983 }
 0x2ac   : > { %v2184_v27 = vpop.permute.xlu1 %2183  ;;  %v1996_v2 = vsel %vm1993_vm5, %v1982_v15, %v1984_v26  ;;  %v2860_v26 = vshrl.u32 %v2859_v23, 7 }
 0x2ad   : > { %5291 = vmatprep.subr.bf16.mxu1 %v1996_v2 }
 0x2ae   : > { %5288 = vmatmul.mubr.msk.bf16.vlgmr.msra.gmra.mrb[0].mxu1 %vm1009_vm0, %v5630_v53 }
 0x2af   : > { %5292 = vmatpush3.bf16.msra.mxu1 %v1996_v2  ;;  %v2186_v1 = vpop.permute.xlu0 %2185  ;;  %5057 = vmatmul.mubr.msk.bf16.vlgmr.msra.gmra.mrb[0].mxu0 %vm1009_vm0, %v5631_v28 }
 0x2b0   : > { %v2182_v29 = vpop.permute.xlu1 %2181  ;;  %v2199_v31 = vsel %vm2197_vm6, %v2184_v27, %v2186_v1  ;;  %2054 = vmatprep.mubr.bf16.mxu0 %v5688_v0  ;;  %5295 = vmatprep.mubr.msk.bf16.mxu1 %vm1009_vm0, %v5631_v28  ;;  %v2865_v28 = vsub.s32 1, %v2860_v26 }
 0x2b1   : > { %v2198_v30 = vsel %vm2197_vm6, %v2182_v29, %v2184_v27  ;;  %2216 = vmatprep.subr.bf16.mxu0 %v2199_v31  ;;  %v2861_v27 = vsub.s32 0, %v2860_v26  ;;  %v2869_v29 = vsub.s32 2, %v2860_v26 }
 0x2b2   : > { %2217 = vmatpush1.bf16.msra.mxu0 %v2198_v30 }
 0x2b3   : > { %v1992_v32 = vpop.permute.xlu0 %1991 }
 0x2b4   : > { %v2192_v33 = vpop.permute.xlu1 %2191  ;;  %v1999_v34 = vsel %vm1993_vm5, %v1990_v3, %v1992_v32  ;;  %v5638_v3 = vld [vmem:[%s6751_s4 + $0x88] sm:$0xff]  }
 0x2b5   : > { %5293 = vmatprep.subr.bf16.mxu1 %v1999_v34 }
 0x2b6   : > { %5294 = vmatpush3.bf16.msra.mxu1 %v1999_v34 }
 0x2b7   : > { %v2194_v35 = vpop.permute.xlu0 %2193  ;;  %5058 = vmatmul.mubr.msk.bf16.gmra.mrb[4].mxu0 %vm1009_vm0, %v5632_v7 }
 0x2b8   : > { %v2190_v36 = vpop.permute.xlu1 %2189  ;;  %v2202_v38 = vsel %vm2197_vm6, %v2192_v33, %v2194_v35  ;;  %2248 = vmatprep.mubr.bf16.mxu0 %v5688_v0 }
 0x2b9   : > { %v2201_v37 = vsel %vm2197_vm6, %v2190_v36, %v2192_v33  ;;  %2218 = vmatprep.subr.bf16.mxu0 %v2202_v38 }
 0x2ba   : > { %2219 = vmatpush1.bf16.msra.mxu0 %v2201_v37  ;;  %5296 = vmatmul.mubr.msk.bf16.vlgmr.msra.gmra.mrb[0].mxu1 %vm1009_vm0, %v5632_v7 }
 0x2bb   : > { %v2188_v40 = vpop.permute.xlu0 %2187  ;;  %5303 = vmatprep.mubr.msk.bf16.mxu1 %vm1009_vm0, %v5633_v39 }
 0x2bc   : > { %v2196_v41 = vpop.permute.xlu1 %2195  ;;  %v2200_v42 = vsel %vm2197_vm6, %v2186_v1, %v2188_v40  ;;  %v988_v1 = vld [vmem:[%s6750_s3] sm:$0x7] }
 0x2bd   : > { %5299 = vmatprep.subr.bf16.mxu1 %v2200_v42  ;;  %v2203_v43 = vsel %vm2197_vm6, %v2194_v35, %v2196_v41  ;;  %v6314_v34 = vrot.slane %v988_v1, %v2861_v27  ;;  %v6316_v36 = vrot.slane %v988_v1, %v2865_v28 }
 0x2be   : > { %5300 = vmatpush3.bf16.msra.mxu1 %v2200_v42 }
 0x2bf   : > { %v2388_v44 = vpop.permute.xlu0 %2387  ;;  %5301 = vmatprep.subr.bf16.mxu1 %v2203_v43  ;;  %5067 = vmatmul.mubr.msk.bf16.vlgmr.msra.gmra.mrb[0].mxu0 %vm1009_vm0, %v5633_v39 }
 0x2c0   : > { %v2390_v45 = vpop.permute.xlu1 %2389  ;;  %2258 = vmatprep.mubr.bf16.mxu0 %v5688_v0 }
 0x2c1   : > { %v2403_v46 = vsel %vm2401_vm7, %v2388_v44, %v2390_v45 }
 0x2c2   : > { %2420 = vmatprep.subr.bf16.mxu0 %v2403_v46  ;;  %5302 = vmatpush3.bf16.msra.mxu1 %v2203_v43 }
 0x2c3   : > { %v2386_v48 = vpop.permute.xlu0 %2385 }
 0x2c4   : > { %v2396_v49 = vpop.permute.xlu1 %2395  ;;  %v2402_v51 = vsel %vm2401_vm7, %v2386_v48, %v2388_v44 }
 0x2c5   : > { %2421 = vmatpush1.bf16.msra.mxu0 %v2402_v51 }
 0x2c6   : > { %5304 = vmatmul.mubr.msk.bf16.vlgmr.msra.gmra.mrb[0].mxu1 %vm1009_vm0, %v5634_v47 }
 0x2c7   : > { %v2398_v54 = vpop.permute.xlu0 %2397  ;;  %5068 = vmatmul.mubr.msk.bf16.gmra.mrb[4].mxu0 %vm1009_vm0, %v5634_v47  ;;  %5311 = vmatprep.mubr.msk.bf16.mxu1 %vm1009_vm0, %v5635_v52 }
 0x2c8   : > { %v2394_v55 = vpop.permute.xlu1 %2393  ;;  %v2406_v58 = vsel %vm2401_vm7, %v2396_v49, %v2398_v54  ;;  %2452 = vmatprep.mubr.bf16.mxu0 %v5688_v0 }
 0x2c9   : > { %v2405_v56 = vsel %vm2401_vm7, %v2394_v55, %v2396_v49  ;;  %2422 = vmatprep.subr.bf16.mxu0 %v2406_v58 }
 0x2ca   : > { %2423 = vmatpush1.bf16.msra.mxu0 %v2405_v56 }
 0x2cb   : > { %v2392_v59 = vpop.permute.xlu0 %2391 }
 0x2cc   : > { %v2400_v60 = vpop.permute.xlu1 %2399  ;;  %v2404_v61 = vsel %vm2401_vm7, %v2390_v45, %v2392_v59  ;;  %v2870_v45 = vrot.slane %v988_v1, %v2869_v29 }
 0x2cd   : > { %5307 = vmatprep.subr.bf16.mxu1 %v2404_v61  ;;  %v2407_v62 = vsel %vm2401_vm7, %v2398_v54, %v2400_v60 }
 0x2ce   : > { %5308 = vmatpush3.bf16.msra.mxu1 %v2404_v61 }
 0x2cf   : > { %v2592_v63 = vpop.permute.xlu0 %2591  ;;  %5309 = vmatprep.subr.bf16.mxu1 %v2407_v62  ;;  %5077 = vmatmul.mubr.msk.bf16.vlgmr.msra.gmra.mrb[0].mxu0 %vm1009_vm0, %v5635_v52 }
 0x2d0   : > { %v2594_v4 = vpop.permute.xlu1 %2593  ;;  %2462 = vmatprep.mubr.bf16.mxu0 %v5688_v0 }
 0x2d1   : > { %v2607_v5 = vsel %vm2605_vm8, %v2592_v63, %v2594_v4 }
 0x2d2   : > { %2624 = vmatprep.subr.bf16.mxu0 %v2607_v5  ;;  %5310 = vmatpush3.bf16.msra.mxu1 %v2407_v62 }
 0x2d3   : > { %v2590_v9 = vpop.permute.xlu0 %2589 }
 0x2d4   : > { %v2596_v10 = vpop.permute.xlu1 %2595  ;;  %v2606_v11 = vsel %vm2605_vm8, %v2590_v9, %v2592_v63 }
 0x2d5   : > { %v2608_v12 = vsel %vm2605_vm8, %v2594_v4, %v2596_v10  ;;  %5312 = vmatmul.mubr.msk.bf16.vlgmr.msra.gmra.mrb[0].mxu1 %vm1009_vm0, %v5636_v6  ;;  %2625 = vmatpush1.bf16.msra.mxu0 %v2606_v11 }
 0x2d6   : > { %5315 = vmatprep.subr.bf16.mxu1 %v2608_v12  ;;  %5319 = vmatprep.mubr.msk.bf16.mxu1 %vm1009_vm0, %v5637_v8 }
 0x2d7   : > { %5316 = vmatpush3.bf16.msra.mxu1 %v2608_v12  ;;  %v2600_v13 = vpop.permute.xlu0 %2599  ;;  %5078 = vmatmul.mubr.msk.bf16.gmra.mrb[4].mxu0 %vm1009_vm0, %v5636_v6 }
 0x2d8   : > { %v2602_v14 = vpop.permute.xlu1 %2601  ;;  %2656 = vmatprep.mubr.bf16.mxu0 %v5688_v0 }
 0x2d9   : > { %v2610_v15 = vsel %vm2605_vm8, %v2600_v13, %v2602_v14  ;;  %v5257_v16 = vpop.f32.mrb[8].mxu0 }
 0x2da   : > { %2626 = vmatprep.subr.bf16.mxu0 %v2610_v15  ;;  %v1103_v17 = vpop.f32.mrb[9].mxu0 }
 0x2db   : > { %v2598_v18 = vpop.permute.xlu0 %2597  ;;  %v5258_v50 = vpop.f32.mrb[10].mxu0 }
 0x2dc   : > { %v2604_v19 = vpop.permute.xlu1 %2603  ;;  %v2609_v20 = vsel %vm2605_vm8, %v2598_v18, %v2600_v13  ;;  %v1106_v53 = vpop.f32.mrb[11].mxu0 }
 0x2dd   : > { %v2611_v21 = vsel %vm2605_vm8, %v2602_v14, %v2604_v19  ;;  %2627 = vmatpush1.bf16.msra.mxu0 %v2609_v20 }
 0x2de   : > { %5317 = vmatprep.subr.bf16.mxu1 %v2611_v21 }
 0x2df   : > { %5318 = vmatpush3.bf16.msra.mxu1 %v2611_v21 }
 0x2e0   : > { %5087 = vmatmul.mubr.msk.bf16.vlgmr.msra.gmra.mrb[0].mxu0 %vm1009_vm0, %v5637_v8 }
 0x2e1   : > { %2666 = vmatprep.mubr.bf16.mxu0 %v5688_v0 }
 0x2e2   : > { %5320 = vmatmul.mubr.msk.bf16.vlgmr.msra.gmra.mrb[0].mxu1 %vm1009_vm0, %v5638_v3 }
 0x2e8   : > { %5088 = vmatmul.mubr.msk.bf16.gmra.mrb[4].mxu0 %vm1009_vm0, %v5638_v3 }
 0x2e9   : > { %2991 = vmatprep.mubr.bf16.mxu0 %v5688_v0 }
 0x2ec   : > { %v2781_v22 = vpop.permute.xlu0 %2780 }
 0x2ed   : > { %v2786_v57 = vpop.permute.xlu1 %2785 }
 0x2f0   : > { %v2822_v25 = vpop.permute.xlu0 %2821 }
 0x2f1   : > { %v2817_v24 = vpop.permute.xlu1 %2816 }
 0x2f4   : > { %v2796_v30 = vpop.permute.xlu0 %2795 }
 0x2f5   : > { %v2791_v2 = vpop.permute.xlu1 %2790 }
 0x2f8   : > { %v2832_v6 = vpop.permute.xlu0 %2831 }
 0x2f9   : > { %v2827_v56 = vpop.permute.xlu1 %2826 }
 0x3b3   : > { %v2658_v31 = vpop.f32.mrb[0].mxu0 }
 0x3b4   : > { %v2798_v32 = vmul.f32 %v2781_v22, %v2658_v31  ;;  %v2660_v33 = vpop.f32.mrb[1].mxu0 }
 0x3b5   : > { %v5321_v7 = vpop.f32.mrb[0].mxu1  ;;  %v2799_v35 = vmul.f32 %v2781_v22, %v2660_v33  ;;  %v2662_v38 = vpop.f32.mrb[2].mxu0 }
 0x3b6   : > { %v5395_v37 = vadd.f32 %v5321_v7, %v5257_v16  ;;  %v2711_v39 = vpop.f32.mrb[1].mxu1  ;;  %v2834_v40 = vadd.f32 %v2817_v24, %v2798_v32  ;;  %v2801_v41 = vmul.f32 %v2786_v57, %v2662_v38  ;;  %v2664_v43 = vpop.f32.mrb[3].mxu0 }
 0x3b7   : > { %v5396_v42 = vadd.f32 %v2711_v39, %v1103_v17  ;;  %v5322_v44 = vpop.f32.mrb[2].mxu1  ;;  %v2835_v46 = vadd.f32 %v2817_v24, %v2799_v35  ;;  %v2802_v48 = vmul.f32 %v2786_v57, %v2664_v43 }
 0x3b8   : > { %v2806_v47 = vmul.f32 %v5395_v37, %v2791_v2  ;;  %v5397_v49 = vadd.f32 %v5322_v44, %v5258_v50  ;;  %v2714_v51 = vpop.f32.mrb[3].mxu1  ;;  %v2846_v52 = vmax.f32 %v2834_v40, 0.0  ;;  %v2837_v54 = vadd.f32 %v2822_v25, %v2801_v41  ;;  %v5639_v44 = vld [vmem:[%s6754_s7] sm:$0xff]  }
 0x3b9   : > { %v2800_v55 = vmul.f32 %v5396_v42, %v2781_v22  ;;  %v5398_v58 = vadd.f32 %v2714_v51, %v1106_v53  ;;  %v2847_v59 = vmax.f32 %v2835_v46, 0.0  ;;  %v2838_v61 = vadd.f32 %v2822_v25, %v2802_v48  ;;  %5327 = vmatprep.mubr.msk.bf16.mxu1 %vm1009_vm0, %v5639_v44 }
 0x3ba   : > { %v2842_v60 = vadd.f32 %v2827_v56, %v2806_v47  ;;  %v2809_v62 = vmul.f32 %v5397_v49, %v2796_v30  ;;  %v2874_v63 = vmul.f32 %v6314_v34, %v2846_v52  ;;  %v2849_v4 = vmax.f32 %v2837_v54, 0.0  ;;  %v5640_v52 = vld [vmem:[%s6754_s7 + $0x8] sm:$0xff]  }
 0x3bb   : > { %v2836_v5 = vadd.f32 %v2817_v24, %v2800_v55  ;;  %v2803_v8 = vmul.f32 %v5398_v58, %v2786_v57  ;;  %v2875_v9 = vmul.f32 %v6316_v36, %v2847_v59  ;;  %v2850_v11 = vmax.f32 %v2838_v61, 0.0  ;;  %v2668_v13 = vpop.f32.mrb[4].mxu0 }
 0x3bc   : > { %v2854_v10 = vmax.f32 %v2842_v60, 0.0  ;;  %v2845_v12 = vadd.f32 %v2832_v6, %v2809_v62  ;;  %v2877_v14 = vmul.f32 %v6314_v34, %v2849_v4  ;;  %v2804_v17 = vmul.f32 %v2791_v2, %v2668_v13  ;;  %v2670_v18 = vpop.f32.mrb[5].mxu0  ;;  %v6528_v13 = vld [vmem:[%s6754_s7 + $0x20] sm:$0xff]  }
 0x3bd   : > { %v2848_v15 = vmax.f32 %v2836_v5, 0.0  ;;  %v2839_v16 = vadd.f32 %v2822_v25, %v2803_v8  ;;  %v2878_v19 = vmul.f32 %v6316_v36, %v2850_v11  ;;  %v2805_v21 = vmul.f32 %v2791_v2, %v2670_v18  ;;  %v2672_v50 = vpop.f32.mrb[6].mxu0  ;;  %v6521_v11 = vld [vmem:[%s6754_s7 + $0x18] sm:$0xff]   ;;  %v4710_v18 = vld [vmem:[%s6755_s8 + $0x8] sm:$0xff] }
 0x3be   : > { %v2857_v20 = vmax.f32 %v2845_v12, 0.0  ;;  %v2882_v3 = vmul.f32 %v2870_v45, %v2854_v10  ;;  %v2840_v57 = vadd.f32 %v2827_v56, %v2804_v17  ;;  %v2807_v22 = vmul.f32 %v2796_v30, %v2672_v50  ;;  %v2674_v23 = vpop.f32.mrb[7].mxu0  ;;  %v4709_v10 = vld [vmem:[%s6755_s8] sm:$0xff] }
 0x3bf   : > { %v2851_v53 = vmax.f32 %v2839_v16, 0.0  ;;  %v2876_v24 = vmul.f32 %v2870_v45, %v2848_v15  ;;  %v2841_v26 = vadd.f32 %v2827_v56, %v2805_v21  ;;  %v2808_v27 = vmul.f32 %v2796_v30, %v2674_v23  ;;  %v6361_v56 = vld [vmem:[%s6754_s7 + $0x10] sm:$0xff]   ;;  %v4745_v21 = vld [vmem:[%s6756_s9] sm:$0xff]  ;;  %v6562_v23 = vld [vmem:[%s6754_s7 + $0x28] sm:$0xff]  }
 0x3c0   : > { %v2887_v28 = vpack.c.bf16 %v2878_v19, %v2875_v9  ;;  %v2885_v1 = vmul.f32 %v2870_v45, %v2857_v20  ;;  %v2852_v29 = vmax.f32 %v2840_v57, 0.0  ;;  %v2843_v31 = vadd.f32 %v2832_v6, %v2807_v22  ;;  %v4711_v16 = vld [vmem:[%s6755_s8 + $0x10] sm:$0xff] }
 0x3c1   : > { %v2879_v25 = vmul.f32 %v2870_v45, %v2851_v53  ;;  %v2886_v32 = vpack.c.bf16 %v2877_v14, %v2874_v63  ;;  %v2853_v33 = vmax.f32 %v2841_v26, 0.0  ;;  %v2844_v7 = vadd.f32 %v2832_v6, %v2808_v27  ;;  %v4747_v22 = vld [vmem:[%s6756_s9 + $0x10] sm:$0xff]  ;;  %v4746_v26 = vld [vmem:[%s6756_s9 + $0x8] sm:$0xff] }
 0x3c2   : > { %2900 = vrot.lane.b32.xlu1 %v2887_v28, %s5699_s19  ;;  %v2891_v2 = vpack.c.bf16 %v2885_v1, %v2882_v3  ;;  %v2855_v35 = vmax.f32 %v2843_v31, 0.0  ;;  %v2880_v39 = vmul.f32 %v6314_v34, %v2852_v29  ;;  %v4712_v3 = vld [vmem:[%s6755_s8 + $0x18] sm:$0xff]  ;;  %v6572_v27 = vld [vmem:[%s6754_s7 + $0x30] sm:$0xff]  }
 0x3c3   : > { %v2888_v37 = vpack.c.bf16 %v2879_v25, %v2876_v24  ;;  %v2856_v38 = vmax.f32 %v2844_v7, 0.0  ;;  %v2881_v30 = vmul.f32 %v6316_v36, %v2853_v33  ;;  %v4748_v31 = vld [vmem:[%s6756_s9 + $0x18] sm:$0xff] }
 0x3c4   : > { %v2883_v40 = vmul.f32 %v6314_v34, %v2855_v35 }
 0x3c5   : > { %2902 = vrot.lane.b32.xlu0 %v2888_v37, %s5699_s19  ;;  %v2884_v41 = vmul.f32 %v6316_v36, %v2856_v38 }
 0x3c6   : > { %v2889_v42 = vpack.c.bf16 %v2883_v40, %v2880_v39 }
 0x3c7   : > { %v2890_v43 = vpack.c.bf16 %v2884_v41, %v2881_v30 }
 0x3c9   : > { %2908 = vrot.lane.b32.xlu0 %v2891_v2, %s5699_s19  ;;  %2906 = vrot.lane.b32.xlu1 %v2890_v43, %s5699_s19  ;;  %v6587_v2 = vld [vmem:[%s6754_s7 + $0x38] sm:$0xff]  }
 0x3cd   : > { %2904 = vrot.lane.b32.xlu0 %v2889_v42, %s5699_s19  ;;  %2898 = vrot.lane.b32.xlu1 %v2886_v32, %s5699_s19  ;;  %v5647_v42 = vld [vmem:[%s6754_s7 + $0x40] sm:$0xff]  }
 0x434   : > { %v2901_v45 = vpop.permute.xlu1 %2900 }
 0x437   : > { %v2903_v34 = vpop.permute.xlu0 %2902 }
 0x438   : > { %v6331_v46 = vsel %vm2910_vm9, %v2901_v45, %v2903_v34  ;;  %2928 = vst.msk [vmem:[#allocation2 + $0x18] sm:$0xff] %vm2910_vm9, %v2903_v34 }
 0x439   : > { %2926 = vst [vmem:[#allocation2 + $0x10] sm:$0xff] %v6331_v46  ;;  %5323 = vmatprep.subr.bf16.mxu1 %v6331_v46  ;;  %3108 = vrot.lane.b32.xlu1 %v6331_v46, %s5691_s21 }
 0x43a   : > { %5324 = vmatpush3.bf16.msra.mxu1 %v6331_v46 }
 0x43b   : > { %v2909_v36 = vpop.permute.xlu0 %2908  ;;  %v2907_v47 = vpop.permute.xlu1 %2906 }
 0x43c   : > { %2932 = vst.msk [vmem:[#allocation2 + $0x38] sm:$0xff] %vm2910_vm9, %v2909_v36  ;;  %v6341_v48 = vsel %vm2910_vm9, %v2907_v47, %v2909_v36 }
 0x43d   : > { %2931 = vst [vmem:[#allocation2 + $0x30] sm:$0xff] %v6341_v48  ;;  %5325 = vmatprep.subr.bf16.mxu1 %v6341_v48  ;;  %3116 = vrot.lane.b32.xlu1 %v6341_v48, %s5691_s21 }
 0x43e   : > { %5326 = vmatpush3.bf16.msra.mxu1 %v6341_v48 }
 0x43f   : > { %v2905_v49 = vpop.permute.xlu0 %2904  ;;  %v6347_v51 = vld [vmem:[#allocation2 + $0x18] sm:$0xff]  ;;  %v2899_v55 = vpop.permute.xlu1 %2898 }
 0x440   : > { %v6354_v54 = vsel %vm2910_vm9, %v2905_v49, %v2907_v47  ;;  %2929 = vst.msk [vmem:[#allocation2 + $0x20] sm:$0xff] %vm2923_vm10, %v2905_v49  ;;  %3110 = vrot.lane.b32.xlu0 %v6347_v51, %s5691_s21  ;;  %v6365_v58 = vsel %vm2910_vm9, %v2899_v55, %v2901_v45  ;;  %2924 = vst.msk [vmem:[#allocation2] sm:$0xff] %vm2923_vm10, %v2899_v55  ;;  %v5648_v47 = vld [vmem:[%s6754_s7 + $0x48] sm:$0xff]  }
 0x441   : > { %2930 = vst [vmem:[#allocation2 + $0x28] sm:$0xff] %v6354_v54  ;;  %2925 = vst [vmem:[#allocation2 + $0x8] sm:$0xff] %v6365_v58  ;;  %3311 = vrot.lane.b32.xlu1 %v6331_v46, %s5692_s26  ;;  %2959 = vmatprep.subr.bf16.mxu0 %v6365_v58 }
 0x442   : > { %5328 = vmatmul.mubr.msk.bf16.vlgmr.msra.gmra.mrb[4].mxu1 %vm1009_vm0, %v5640_v52 }
 0x443   : > { %v6371_v59 = vld [vmem:[#allocation2 + $0x38] sm:$0xff]  ;;  %5335 = vmatprep.mubr.msk.bf16.mxu1 %vm1009_vm0, %v6361_v56 }
 0x444   : > { %3118 = vrot.lane.b32.xlu0 %v6371_v59, %s5691_s21 }
 0x445   : > { %3319 = vrot.lane.b32.xlu1 %v6341_v48, %s5692_s26 }
 0x447   : > { %v6382_v60 = vld [vmem:[#allocation2] sm:$0xff] }
 0x448   : > { %3313 = vrot.lane.b32.xlu0 %v6347_v51, %s5692_s26  ;;  %2960 = vmatpush1.bf16.msra.mxu0 %v6382_v60  ;;  %v6390_v61 = vld [vmem:[#allocation2 + $0x20] sm:$0xff] }
 0x449   : > { %2961 = vmatprep.subr.bf16.mxu0 %v6354_v54  ;;  %3514 = vrot.lane.b32.xlu1 %v6331_v46, %s5693_s27 }
 0x44c   : > { %3321 = vrot.lane.b32.xlu0 %v6371_v59, %s5692_s26  ;;  %2962 = vmatpush1.bf16.msra.mxu0 %v6390_v61 }
 0x44d   : > { %3715 = vrot.lane.b32.xlu1 %v6365_v58, %s5694_s28 }
 0x44f   : > { %5093 = vmatmul.mubr.msk.bf16.vlgmr.msra.gmra.mrb[12].mxu0 %vm1009_vm0, %v5639_v44 }
 0x450   : > { %3516 = vrot.lane.b32.xlu0 %v6347_v51, %s5693_s27  ;;  %3001 = vmatprep.mubr.bf16.mxu0 %v5688_v0 }
 0x451   : > { %3522 = vrot.lane.b32.xlu1 %v6341_v48, %s5693_s27 }
 0x454   : > { %3524 = vrot.lane.b32.xlu0 %v6371_v59, %s5693_s27 }
 0x455   : > { %3713 = vrot.lane.b32.xlu1 %v6382_v60, %s5694_s28 }
 0x457   : > { %5094 = vmatmul.mubr.msk.bf16.gmra.mrb[16].mxu0 %vm1009_vm0, %v5640_v52 }
 0x458   : > { %3717 = vrot.lane.b32.xlu0 %v6331_v46, %s5694_s28  ;;  %3170 = vmatprep.mubr.bf16.mxu0 %v5688_v0 }
 0x459   : > { %3725 = vrot.lane.b32.xlu1 %v6341_v48, %s5694_s28 }
 0x45c   : > { %3723 = vrot.lane.b32.xlu0 %v6354_v54, %s5694_s28 }
 0x45d   : > { %3719 = vrot.lane.b32.xlu1 %v6347_v51, %s5694_s28 }
 0x460   : > { %3721 = vrot.lane.b32.xlu0 %v6390_v61, %s5694_s28 }
 0x461   : > { %3918 = vrot.lane.b32.xlu1 %v6365_v58, %s5695_s30 }
 0x464   : > { %3727 = vrot.lane.b32.xlu0 %v6371_v59, %s5694_s28 }
 0x465   : > { %3916 = vrot.lane.b32.xlu1 %v6382_v60, %s5695_s30 }
 0x468   : > { %3920 = vrot.lane.b32.xlu0 %v6331_v46, %s5695_s30 }
 0x469   : > { %3928 = vrot.lane.b32.xlu1 %v6341_v48, %s5695_s30 }
 0x46c   : > { %3926 = vrot.lane.b32.xlu0 %v6354_v54, %s5695_s30 }
 0x46d   : > { %3922 = vrot.lane.b32.xlu1 %v6347_v51, %s5695_s30 }
 0x470   : > { %3924 = vrot.lane.b32.xlu0 %v6390_v61, %s5695_s30 }
 0x471   : > { %4121 = vrot.lane.b32.xlu1 %v6365_v58, %s5696_s11 }
 0x474   : > { %3930 = vrot.lane.b32.xlu0 %v6371_v59, %s5695_s30 }
 0x475   : > { %4119 = vrot.lane.b32.xlu1 %v6382_v60, %s5696_s11 }
 0x478   : > { %4123 = vrot.lane.b32.xlu0 %v6331_v46, %s5696_s11 }
 0x479   : > { %4131 = vrot.lane.b32.xlu1 %v6341_v48, %s5696_s11 }
 0x47c   : > { %4127 = vrot.lane.b32.xlu0 %v6390_v61, %s5696_s11 }
 0x47d   : > { %4125 = vrot.lane.b32.xlu1 %v6347_v51, %s5696_s11 }
 0x480   : > { %4129 = vrot.lane.b32.xlu0 %v6354_v54, %s5696_s11 }
 0x481   : > { %3106 = vrot.lane.b32.xlu1 %v6365_v58, %s5691_s21 }
 0x484   : > { %4133 = vrot.lane.b32.xlu0 %v6371_v59, %s5696_s11 }
 0x485   : > { %4324 = vrot.lane.b32.xlu1 %v6365_v58, %s5697_s12 }
 0x488   : > { %3104 = vrot.lane.b32.xlu0 %v6382_v60, %s5691_s21 }
 0x489   : > { %4322 = vrot.lane.b32.xlu1 %v6382_v60, %s5697_s12 }
 0x48c   : > { %4326 = vrot.lane.b32.xlu0 %v6331_v46, %s5697_s12 }
 0x48d   : > { %3112 = vrot.lane.b32.xlu1 %v6390_v61, %s5691_s21 }
 0x490   : > { %4330 = vrot.lane.b32.xlu0 %v6390_v61, %s5697_s12 }
 0x491   : > { %4334 = vrot.lane.b32.xlu1 %v6341_v48, %s5697_s12 }
 0x494   : > { %3114 = vrot.lane.b32.xlu0 %v6354_v54, %s5691_s21 }
 0x495   : > { %3309 = vrot.lane.b32.xlu1 %v6365_v58, %s5692_s26 }
 0x498   : > { %4332 = vrot.lane.b32.xlu0 %v6354_v54, %s5697_s12 }
 0x499   : > { %4328 = vrot.lane.b32.xlu1 %v6347_v51, %s5697_s12 }
 0x49c   : > { %3307 = vrot.lane.b32.xlu0 %v6382_v60, %s5692_s26 }
 0x49d   : > { %3315 = vrot.lane.b32.xlu1 %v6390_v61, %s5692_s26 }
 0x4a0   : > { %4336 = vrot.lane.b32.xlu0 %v6371_v59, %s5697_s12 }
 0x4a1   : > { %4527 = vrot.lane.b32.xlu1 %v6365_v58, %s5698_s13 }
 0x4a4   : > { %3317 = vrot.lane.b32.xlu0 %v6354_v54, %s5692_s26 }
 0x4a5   : > { %4525 = vrot.lane.b32.xlu1 %v6382_v60, %s5698_s13 }
 0x4a8   : > { %4529 = vrot.lane.b32.xlu0 %v6331_v46, %s5698_s13 }
 0x4a9   : > { %4537 = vrot.lane.b32.xlu1 %v6341_v48, %s5698_s13 }
 0x4ab   : > { %v6491_v62 = vpop.permute.xlu1 %3108 }
 0x4ac   : > { %4533 = vrot.lane.b32.xlu0 %v6390_v61, %s5698_s13 }
 0x4ad   : > { %3512 = vrot.lane.b32.xlu1 %v6365_v58, %s5693_s27 }
 0x4af   : > { %v6499_v63 = vpop.permute.xlu1 %3116 }
 0x4b0   : > { %4535 = vrot.lane.b32.xlu0 %v6354_v54, %s5698_s13 }
 0x4b1   : > { %3520 = vrot.lane.b32.xlu1 %v6354_v54, %s5693_s27 }
 0x4b2   : > { %v3111_v4 = vpop.permute.xlu0 %3110 }
 0x4b3   : > { %v3122_v5 = vsel %vm1177_vm1, %v6491_v62, %v3111_v4  ;;  %v6507_v6 = vpop.permute.xlu1 %3311 }
 0x4b4   : > { %3510 = vrot.lane.b32.xlu0 %v6382_v60, %s5693_s27  ;;  %5331 = vmatprep.subr.bf16.mxu1 %v3122_v5 }
 0x4b5   : > { %5332 = vmatpush3.bf16.msra.mxu1 %v3122_v5  ;;  %4531 = vrot.lane.b32.xlu1 %v6347_v51, %s5698_s13 }
 0x4b6   : > { %v3119_v8 = vpop.permute.xlu0 %3118 }
 0x4b7   : > { %v3125_v9 = vsel %vm1177_vm1, %v6499_v63, %v3119_v8  ;;  %v6523_v12 = vpop.permute.xlu1 %3319  ;;  %v5649_v8 = vld [vmem:[%s6754_s7 + $0x50] sm:$0xff]  }
 0x4b8   : > { %3518 = vrot.lane.b32.xlu0 %v6390_v61, %s5693_s27  ;;  %5333 = vmatprep.subr.bf16.mxu1 %v3125_v9 }
 0x4b9   : > { %5334 = vmatpush3.bf16.msra.mxu1 %v3125_v9  ;;  %4715 = vperm.xlu1 %5620, %v4709_v10  }
 0x4ba   : > { %v3314_v14 = vpop.permute.xlu0 %3313 }
 0x4bb   : > { %v3325_v15 = vsel %vm1381_vm2, %v6507_v6, %v3314_v14  ;;  %v6539_v17 = vpop.permute.xlu1 %3514 }
 0x4bc   : > { %4539 = vrot.lane.b32.xlu0 %v6371_v59, %s5698_s13  ;;  %5336 = vmatmul.mubr.msk.bf16.vlgmr.msra.gmra.mrb[4].mxu1 %vm1009_vm0, %v6521_v11 }
 0x4bd   : > { %5339 = vmatprep.subr.bf16.mxu1 %v3325_v15  ;;  %5343 = vmatprep.mubr.msk.bf16.mxu1 %vm1009_vm0, %v6528_v13 }
 0x4be   : > { %v3322_v19 = vpop.permute.xlu0 %3321  ;;  %5340 = vmatpush3.bf16.msra.mxu1 %v3325_v15  ;;  %4725 = vperm.xlu1 %5620, %v4711_v16  }
 0x4bf   : > { %v3328_v20 = vsel %vm1381_vm2, %v6523_v12, %v3322_v19  ;;  %v3716_v50 = vpop.permute.xlu1 %3715 }
 0x4c0   : > { %4720 = vperm.xlu0 %5619, %v4710_v18   ;;  %5341 = vmatprep.subr.bf16.mxu1 %v3328_v20 }
 0x4c2   : > { %v3517_v53 = vpop.permute.xlu0 %3516  ;;  %5342 = vmatpush3.bf16.msra.mxu1 %v3328_v20  ;;  %4751 = vperm.xlu1 %5620, %v4745_v21   ;;  %v5650_v20 = vld [vmem:[%s6754_s7 + $0x58] sm:$0xff]  }
 0x4c3   : > { %v3528_v57 = vsel %vm1585_vm3, %v6539_v17, %v3517_v53  ;;  %v6564_v24 = vpop.permute.xlu1 %3522 }
 0x4c4   : > { %4730 = vperm.xlu0 %5619, %v4712_v3   ;;  %5347 = vmatprep.subr.bf16.mxu1 %v3528_v57 }
 0x4c6   : > { %v3525_v28 = vpop.permute.xlu0 %3524  ;;  %4761 = vperm.xlu1 %5620, %v4747_v22  }
 0x4c7   : > { %v3531_v1 = vsel %vm1585_vm3, %v6564_v24, %v3525_v28  ;;  %v3714_v29 = vpop.permute.xlu1 %3713 }
 0x4c8   : > { %4756 = vperm.xlu0 %5619, %v4746_v26   ;;  %5344 = vmatmul.mubr.msk.bf16.vlgmr.msra.gmra.mrb[4].mxu1 %vm1009_vm0, %v6562_v23  ;;  %v3729_v38 = vsel %vm1789_vm4, %v3714_v29, %v3716_v50 }
 0x4c9   : > { %5348 = vmatpush3.bf16.msra.mxu1 %v3528_v57  ;;  %5351 = vmatprep.mubr.msk.bf16.mxu1 %vm1009_vm0, %v6572_v27 }
 0x4ca   : > { %v3718_v25 = vpop.permute.xlu0 %3717  ;;  %5349 = vmatprep.subr.bf16.mxu1 %v3531_v1 }
 0x4cb   : > { %v3730_v32 = vsel %vm1789_vm4, %v3716_v50, %v3718_v25  ;;  %v3726_v33 = vpop.permute.xlu1 %3725 }
 0x4cc   : > { %4766 = vperm.xlu0 %5619, %v4748_v31  }
 0x4cd   : > { %5350 = vmatpush3.bf16.msra.mxu1 %v3531_v1 }
 0x4ce   : > { %v3724_v7 = vpop.permute.xlu0 %3723  ;;  %3747 = vmatprep.subr.bf16.mxu1 %v3730_v32 }
 0x4cf   : > { %v3720_v35 = vpop.permute.xlu1 %3719  ;;  %v3733_v40 = vsel %vm1789_vm4, %v3724_v7, %v3726_v33 }
 0x4d0   : > { %v3731_v44 = vsel %vm1789_vm4, %v3718_v25, %v3720_v35 }
 0x4d2   : > { %v3722_v37 = vpop.permute.xlu0 %3721 }
 0x4d3   : > { %v3919_v39 = vpop.permute.xlu1 %3918  ;;  %v3732_v41 = vsel %vm1789_vm4, %v3722_v37, %v3724_v7  ;;  %v5651_v7 = vld [vmem:[%s6754_s7 + $0x60] sm:$0xff]  }
 0x4d4   : > { %5352 = vmatmul.mubr.msk.bf16.vlgmr.msra.gmra.mrb[4].mxu1 %vm1009_vm0, %v6587_v2 }
 0x4d5   : > { %3748 = vmatpush1.bf16.msra.mxu1 %v3729_v38  ;;  %3779 = vmatprep.mubr.bf16.mxu1 %v5688_v0 }
 0x4d6   : > { %v3728_v30 = vpop.permute.xlu0 %3727  ;;  %3749 = vmatprep.subr.bf16.mxu1 %v3733_v40 }
 0x4d7   : > { %v3917_v43 = vpop.permute.xlu1 %3916  ;;  %v3734_v46 = vsel %vm1789_vm4, %v3726_v33, %v3728_v30 }
 0x4d8   : > { %v3932_v59 = vsel %vm1993_vm5, %v3917_v43, %v3919_v39 }
 0x4d9   : > { %3750 = vmatpush1.bf16.msra.mxu1 %v3732_v41  ;;  %v5652_v41 = vld [vmem:[%s6754_s7 + $0x68] sm:$0xff]  }
 0x4da   : > { %v3921_v45 = vpop.permute.xlu0 %3920  ;;  %5355 = vmatprep.subr.bf16.mxu1 %v3731_v44 }
 0x4db   : > { %v3929_v34 = vpop.permute.xlu1 %3928  ;;  %v3933_v49 = vsel %vm1993_vm5, %v3919_v39, %v3921_v45 }
 0x4dc   : > { %5133 = vmatmul.mubr.msk.bf16.vlgmr.msra.gmra.mrb[8].mxu1 %vm1009_vm0, %v5647_v42 }
 0x4dd   : > { %5356 = vmatpush3.bf16.msra.mxu1 %v3731_v44  ;;  %3789 = vmatprep.mubr.bf16.mxu1 %v5688_v0 }
 0x4de   : > { %v3927_v36 = vpop.permute.xlu0 %3926  ;;  %5357 = vmatprep.subr.bf16.mxu1 %v3734_v46 }
 0x4df   : > { %v3923_v48 = vpop.permute.xlu1 %3922  ;;  %v3936_v61 = vsel %vm1993_vm5, %v3927_v36, %v3929_v34 }
 0x4e0   : > { %v3934_v10 = vsel %vm1993_vm5, %v3921_v45, %v3923_v48 }
 0x4e1   : > { %5358 = vmatpush3.bf16.msra.mxu1 %v3734_v46 }
 0x4e2   : > { %v3925_v51 = vpop.permute.xlu0 %3924  ;;  %3950 = vmatprep.subr.bf16.mxu1 %v3933_v49 }
 0x4e3   : > { %v4122_v52 = vpop.permute.xlu1 %4121  ;;  %v3935_v5 = vsel %vm1993_vm5, %v3925_v51, %v3927_v36 }
 0x4e4   : > { %5134 = vmatmul.mubr.msk.bf16.gmra.mrb[12].mxu1 %vm1009_vm0, %v5648_v47 }
 0x4e5   : > { %5359 = vmatprep.mubr.msk.bf16.mxu1 %vm1009_vm0, %v5647_v42 }
 0x4e6   : > { %v3931_v54 = vpop.permute.xlu0 %3930 }
 0x4e7   : > { %v4120_v55 = vpop.permute.xlu1 %4119  ;;  %v3937_v16 = vsel %vm1993_vm5, %v3929_v34, %v3931_v54 }
 0x4e8   : > { %v4135_v28 = vsel %vm2197_vm6, %v4120_v55, %v4122_v52 }
 0x4ea   : > { %v4124_v58 = vpop.permute.xlu0 %4123 }
 0x4eb   : > { %v4132_v60 = vpop.permute.xlu1 %4131  ;;  %v4136_v50 = vsel %vm2197_vm6, %v4122_v52, %v4124_v58  ;;  %v5653_v52 = vld [vmem:[%s6754_s7 + $0x70] sm:$0xff]  }
 0x4ec   : > { %5360 = vmatmul.mubr.msk.bf16.vlgmr.msra.gmra.mrb[4].mxu1 %vm1009_vm0, %v5648_v47 }
 0x4ed   : > { %3951 = vmatpush1.bf16.msra.mxu1 %v3932_v59  ;;  %3982 = vmatprep.mubr.bf16.mxu1 %v5688_v0 }
 0x4ee   : > { %v4128_v4 = vpop.permute.xlu0 %4127  ;;  %3952 = vmatprep.subr.bf16.mxu1 %v3936_v61 }
 0x4ef   : > { %v4126_v9 = vpop.permute.xlu1 %4125 }
 0x4f0   : > { %v4137_v37 = vsel %vm2197_vm6, %v4124_v58, %v4126_v9 }
 0x4f1   : > { %3953 = vmatpush1.bf16.msra.mxu1 %v3935_v5 }
 0x4f2   : > { %v4130_v14 = vpop.permute.xlu0 %4129  ;;  %5363 = vmatprep.subr.bf16.mxu1 %v3934_v10 }
 0x4f3   : > { %v3107_v15 = vpop.permute.xlu1 %3106  ;;  %v4139_v29 = vsel %vm2197_vm6, %v4130_v14, %v4132_v60  ;;  %v4138_v33 = vsel %vm2197_vm6, %v4128_v4, %v4130_v14 }
 0x4f4   : > { %5143 = vmatmul.mubr.msk.bf16.vlgmr.msra.gmra.mrb[8].mxu1 %vm1009_vm0, %v5649_v8  ;;  %v3121_v18 = vsel %vm1177_vm1, %v3107_v15, %v6491_v62 }
 0x4f5   : > { %5364 = vmatpush3.bf16.msra.mxu1 %v3934_v10  ;;  %3992 = vmatprep.mubr.bf16.mxu1 %v5688_v0 }
 0x4f6   : > { %v4134_v19 = vpop.permute.xlu0 %4133  ;;  %5365 = vmatprep.subr.bf16.mxu1 %v3937_v16  ;;  %3138 = vmatprep.subr.bf16.mxu0 %v3121_v18 }
 0x4f7   : > { %v6625_v21 = vpop.permute.xlu1 %4324  ;;  %v4140_v40 = vsel %vm2197_vm6, %v4132_v60, %v4134_v19 }
 0x4f9   : > { %5366 = vmatpush3.bf16.msra.mxu1 %v3937_v16 }
 0x4fa   : > { %v3105_v3 = vpop.permute.xlu0 %3104  ;;  %4153 = vmatprep.subr.bf16.mxu1 %v4136_v50 }
 0x4fb   : > { %v3120_v53 = vsel %vm1177_vm1, %v3105_v3, %v3107_v15  ;;  %v4323_v62 = vpop.permute.xlu1 %4322 }
 0x4fc   : > { %5144 = vmatmul.mubr.msk.bf16.gmra.mrb[12].mxu1 %vm1009_vm0, %v5650_v20  ;;  %3139 = vmatpush1.bf16.msra.mxu0 %v3120_v53  ;;  %v4338_v48 = vsel %vm2401_vm7, %v4323_v62, %v6625_v21 }
 0x4fd   : > { %5367 = vmatprep.mubr.msk.bf16.mxu1 %vm1009_vm0, %v5649_v8 }
 0x4fe   : > { %v6631_v57 = vpop.permute.xlu0 %4326 }
 0x4ff   : > { %v3113_v22 = vpop.permute.xlu1 %3112 }
 0x502   : > { %v4331_v26 = vpop.permute.xlu0 %4330 }
 0x503   : > { %v6635_v1 = vpop.permute.xlu1 %4334 }
 0x504   : > { %5368 = vmatmul.mubr.msk.bf16.vlgmr.msra.gmra.mrb[4].mxu1 %vm1009_vm0, %v5650_v20 }
 0x505   : > { %4154 = vmatpush1.bf16.msra.mxu1 %v4135_v28  ;;  %4185 = vmatprep.mubr.bf16.mxu1 %v5688_v0 }
 0x506   : > { %v3115_v31 = vpop.permute.xlu0 %3114  ;;  %4155 = vmatprep.subr.bf16.mxu1 %v4139_v29 }
 0x507   : > { %v3124_v25 = vsel %vm1177_vm1, %v3115_v31, %v6499_v63  ;;  %v3123_v32 = vsel %vm1177_vm1, %v3113_v22, %v3115_v31  ;;  %v3310_v35 = vpop.permute.xlu1 %3309 }
 0x508   : > { %3140 = vmatprep.subr.bf16.mxu0 %v3124_v25  ;;  %v3324_v38 = vsel %vm1381_vm2, %v3310_v35, %v6507_v6 }
 0x509   : > { %3141 = vmatpush1.bf16.msra.mxu0 %v3123_v32  ;;  %4156 = vmatpush1.bf16.msra.mxu1 %v4138_v33 }
 0x50a   : > { %v4333_v39 = vpop.permute.xlu0 %4332  ;;  %5371 = vmatprep.subr.bf16.mxu1 %v4137_v37  ;;  %3341 = vmatprep.subr.bf16.mxu0 %v3324_v38 }
 0x50b   : > { %v4329_v63 = vpop.permute.xlu1 %4328  ;;  %v4342_v49 = vsel %vm2401_vm7, %v4333_v39, %v6635_v1  ;;  %v4341_v51 = vsel %vm2401_vm7, %v4331_v26, %v4333_v39 }
 0x50c   : > { %5153 = vmatmul.mubr.msk.bf16.vlgmr.msra.gmra.mrb[8].mxu1 %vm1009_vm0, %v5651_v7  ;;  %5103 = vmatmul.mubr.msk.bf16.vlgmr.msra.gmra.mrb[12].mxu0 %vm1009_vm0, %v6361_v56  ;;  %v4339_v56 = vsel %vm2401_vm7, %v6625_v21, %v6631_v57 }
 0x50d   : > { %5372 = vmatpush3.bf16.msra.mxu1 %v4137_v37  ;;  %4195 = vmatprep.mubr.bf16.mxu1 %v5688_v0 }
 0x50e   : > { %v3308_v30 = vpop.permute.xlu0 %3307  ;;  %5373 = vmatprep.subr.bf16.mxu1 %v4140_v40  ;;  %3180 = vmatprep.mubr.bf16.mxu0 %v5688_v0 }
 0x50f   : > { %v3323_v6 = vsel %vm1381_vm2, %v3308_v30, %v3310_v35  ;;  %v3316_v42 = vpop.permute.xlu1 %3315 }
 0x510   : > { %3342 = vmatpush1.bf16.msra.mxu0 %v3323_v6 }
 0x511   : > { %5374 = vmatpush3.bf16.msra.mxu1 %v4140_v40 }
 0x512   : > { %v4337_v43 = vpop.permute.xlu0 %4336  ;;  %4356 = vmatprep.subr.bf16.mxu1 %v4339_v56 }
 0x513   : > { %v4528_v44 = vpop.permute.xlu1 %4527  ;;  %v4343_v59 = vsel %vm2401_vm7, %v6635_v1, %v4337_v43 }
 0x514   : > { %5154 = vmatmul.mubr.msk.bf16.gmra.mrb[12].mxu1 %vm1009_vm0, %v5652_v41  ;;  %5104 = vmatmul.mubr.msk.bf16.gmra.mrb[16].mxu0 %vm1009_vm0, %v6521_v11 }
 0x515   : > { %5375 = vmatprep.mubr.msk.bf16.mxu1 %vm1009_vm0, %v5651_v7  ;;  %3373 = vmatprep.mubr.bf16.mxu0 %v5688_v0 }
 0x516   : > { %v3318_v45 = vpop.permute.xlu0 %3317 }
 0x517   : > { %v3327_v34 = vsel %vm1381_vm2, %v3318_v45, %v6523_v12  ;;  %v3326_v46 = vsel %vm1381_vm2, %v3316_v42, %v3318_v45  ;;  %v4526_v36 = vpop.permute.xlu1 %4525 }
 0x518   : > { %3343 = vmatprep.subr.bf16.mxu0 %v3327_v34 }
 0x519   : > { %3344 = vmatpush1.bf16.msra.mxu0 %v3326_v46 }
 0x51a   : > { %v4530_v47 = vpop.permute.xlu0 %4529 }
 0x51b   : > { %v4538_v11 = vpop.permute.xlu1 %4537  ;;  %v4542_v5 = vsel %vm2605_vm8, %v4528_v44, %v4530_v47 }
 0x51c   : > { %5376 = vmatmul.mubr.msk.bf16.vlgmr.msra.gmra.mrb[4].mxu1 %vm1009_vm0, %v5652_v41  ;;  %5113 = vmatmul.mubr.msk.bf16.vlgmr.msra.gmra.mrb[12].mxu0 %vm1009_vm0, %v6528_v13  ;;  %v4340_v13 = vsel %vm2401_vm7, %v6631_v57, %v4329_v63 }
 0x51d   : > { %4357 = vmatpush1.bf16.msra.mxu1 %v4338_v48  ;;  %4388 = vmatprep.mubr.bf16.mxu1 %v5688_v0 }
 0x51e   : > { %v4534_v12 = vpop.permute.xlu0 %4533  ;;  %4358 = vmatprep.subr.bf16.mxu1 %v4342_v49  ;;  %3383 = vmatprep.mubr.bf16.mxu0 %v5688_v0 }
 0x51f   : > { %v3513_v54 = vpop.permute.xlu1 %3512 }
 0x520   : > { %v3527_v55 = vsel %vm1585_vm3, %v3513_v54, %v6539_v17 }
 0x521   : > { %4359 = vmatpush1.bf16.msra.mxu1 %v4341_v51  ;;  %3544 = vmatprep.subr.bf16.mxu0 %v3527_v55 }
 0x522   : > { %v4536_v58 = vpop.permute.xlu0 %4535  ;;  %5379 = vmatprep.subr.bf16.mxu1 %v4340_v13 }
 0x523   : > { %v3521_v60 = vpop.permute.xlu1 %3520  ;;  %v4545_v10 = vsel %vm2605_vm8, %v4536_v58, %v4538_v11  ;;  %v4544_v15 = vsel %vm2605_vm8, %v4534_v12, %v4536_v58 }
 0x524   : > { %5163 = vmatmul.mubr.msk.bf16.vlgmr.msra.gmra.mrb[8].mxu1 %vm1009_vm0, %v5653_v52  ;;  %5114 = vmatmul.mubr.msk.bf16.gmra.mrb[16].mxu0 %vm1009_vm0, %v6562_v23  ;;  %v3530_v4 = vsel %vm1585_vm3, %v3521_v60, %v6564_v24  ;;  %v5654_v23 = vld [vmem:[%s6754_s7 + $0x78] sm:$0xff]   ;;  %v4541_v24 = vsel %vm2605_vm8, %v4526_v36, %v4528_v44 }
 0x525   : > { %5380 = vmatpush3.bf16.msra.mxu1 %v4340_v13  ;;  %4398 = vmatprep.mubr.bf16.mxu1 %v5688_v0 }
 0x526   : > { %v3511_v61 = vpop.permute.xlu0 %3510  ;;  %5381 = vmatprep.subr.bf16.mxu1 %v4343_v59  ;;  %3576 = vmatprep.mubr.bf16.mxu0 %v5688_v0 }
 0x527   : > { %v3526_v17 = vsel %vm1585_vm3, %v3511_v61, %v3513_v54  ;;  %v4532_v14 = vpop.permute.xlu1 %4531 }
 0x528   : > { %3545 = vmatpush1.bf16.msra.mxu0 %v3526_v17  ;;  %v4543_v16 = vsel %vm2605_vm8, %v4530_v47, %v4532_v14 }
 0x529   : > { %5382 = vmatpush3.bf16.msra.mxu1 %v4343_v59  ;;  %3546 = vmatprep.subr.bf16.mxu0 %v3530_v4 }
 0x52a   : > { %v3519_v8 = vpop.permute.xlu0 %3518  ;;  %4559 = vmatprep.subr.bf16.mxu1 %v4542_v5 }
 0x52b   : > { %v3529_v9 = vsel %vm1585_vm3, %v3519_v8, %v3521_v60 }
 0x52c   : > { %5164 = vmatmul.mubr.msk.bf16.gmra.mrb[12].mxu1 %vm1009_vm0, %v5654_v23  ;;  %3547 = vmatpush1.bf16.msra.mxu0 %v3529_v9 }
 0x52d   : > { %5383 = vmatprep.mubr.msk.bf16.mxu1 %vm1009_vm0, %v5653_v52 }
 0x52e   : > { %v4540_v18 = vpop.permute.xlu0 %4539 }
 0x52f   : > { %5123 = vmatmul.mubr.msk.bf16.vlgmr.msra.gmra.mrb[12].mxu0 %vm1009_vm0, %v6572_v27  ;;  %v5655_v27 = vld [vmem:[%s6754_s7 + $0x80] sm:$0xff]   ;;  %v4546_v19 = vsel %vm2605_vm8, %v4538_v11, %v4540_v18 }
 0x530   : > { %3586 = vmatprep.mubr.bf16.mxu0 %v5688_v0 }
 0x534   : > { %5384 = vmatmul.mubr.msk.bf16.vlgmr.msra.gmra.mrb[4].mxu1 %vm1009_vm0, %v5654_v23 }
 0x535   : > { %4560 = vmatpush1.bf16.msra.mxu1 %v4541_v24  ;;  %4591 = vmatprep.mubr.bf16.mxu1 %v5688_v0 }
 0x536   : > { %4561 = vmatprep.subr.bf16.mxu1 %v4545_v10 }
 0x537   : > { %5124 = vmatmul.mubr.msk.bf16.gmra.mrb[16].mxu0 %vm1009_vm0, %v6587_v2  ;;  %v5656_v2 = vld [vmem:[%s6754_s7 + $0x88] sm:$0xff]  }
 0x538   : > { %v4716_v53 = vpop.permute.xlu1 %4715 }
 0x539   : > { %4562 = vmatpush1.bf16.msra.mxu1 %v4544_v15 }
 0x53a   : > { %5387 = vmatprep.subr.bf16.mxu1 %v4543_v16 }
 0x53c   : > { %5173 = vmatmul.mubr.msk.bf16.vlgmr.msra.gmra.mrb[8].mxu1 %vm1009_vm0, %v5655_v27 }
 0x53d   : > { %5388 = vmatpush3.bf16.msra.mxu1 %v4543_v16  ;;  %4601 = vmatprep.mubr.bf16.mxu1 %v5688_v0  ;;  %v4726_v26 = vpop.permute.xlu1 %4725 }
 0x53e   : > { %5389 = vmatprep.subr.bf16.mxu1 %v4546_v19 }
 0x53f   : > { %v6727_v62 = vpop.permute.xlu0 %4720 }
 0x541   : > { %5390 = vmatpush3.bf16.msra.mxu1 %v4546_v19  ;;  %v4752_v38 = vpop.permute.xlu1 %4751 }
 0x543   : > { %v4731_v1 = vpop.permute.xlu0 %4730 }
 0x544   : > { %5174 = vmatmul.mubr.msk.bf16.gmra.mrb[12].mxu1 %vm1009_vm0, %v5656_v2 }
 0x545   : > { %5391 = vmatprep.mubr.msk.bf16.mxu1 %vm1009_vm0, %v5655_v27  ;;  %v4762_v54 = vpop.permute.xlu1 %4761 }
 0x547   : > { %v4757_v6 = vpop.permute.xlu0 %4756 }
 0x54b   : > { %v4767_v60 = vpop.permute.xlu0 %4766 }
 0x54c   : > { %5392 = vmatmul.mubr.msk.bf16.vlgmr.msra.gmra.mrb[4].mxu1 %vm1009_vm0, %v5656_v2 }
 0x602   : > { %v3578_v20 = vpop.f32.mrb[12].mxu0 }
 0x603   : > { %v3580_v21 = vpop.f32.mrb[13].mxu0 }
 0x604   : > { %v3582_v50 = vpop.f32.mrb[14].mxu0 }
 0x605   : > { %v3584_v3 = vpop.f32.mrb[15].mxu0 }
 0x60a   : > { %v3588_v0 = vpop.f32.mrb[16].mxu0 }
 0x60b   : > { %v3590_v57 = vpop.f32.mrb[17].mxu0 }
 0x60c   : > { %v3592_v22 = vpop.f32.mrb[18].mxu0 }
 0x60d   : > { %v3594_v28 = vpop.f32.mrb[19].mxu0 }
 0x60f   : > { %v4593_v29 = vpop.f32.mrb[8].mxu1 }
 0x610   : > { %v5399_v31 = vadd.f32 %v4593_v29, %v3578_v20  ;;  %v4595_v25 = vpop.f32.mrb[9].mxu1 }
 0x611   : > { %v5400_v32 = vadd.f32 %v4595_v25, %v3580_v21  ;;  %v4597_v33 = vpop.f32.mrb[10].mxu1 }
 0x612   : > { %v4733_v7 = vmul.f32 %v5399_v31, %v4716_v53  ;;  %v5401_v35 = vadd.f32 %v4597_v33, %v3582_v50  ;;  %v4599_v37 = vpop.f32.mrb[11].mxu1 }
 0x613   : > { %v4734_v39 = vmul.f32 %v5400_v32, %v4716_v53  ;;  %v5402_v63 = vadd.f32 %v4599_v37, %v3584_v3 }
 0x614   : > { %v4769_v40 = vadd.f32 %v4752_v38, %v4733_v7  ;;  %v4736_v30 = vmul.f32 %v5401_v35, %v6727_v62 }
 0x615   : > { %v4770_v41 = vadd.f32 %v4752_v38, %v4734_v39  ;;  %v4737_v42 = vmul.f32 %v5402_v63, %v6727_v62 }
 0x616   : > { %v4781_v56 = vmax.f32 %v4769_v40, 0.0  ;;  %v4772_v43 = vadd.f32 %v4757_v6, %v4736_v30 }
 0x617   : > { %v4782_v44 = vmax.f32 %v4770_v41, 0.0  ;;  %v4773_v45 = vadd.f32 %v4757_v6, %v4737_v42  ;;  %v4603_v34 = vpop.f32.mrb[12].mxu1 }
 0x618   : > { %4793 = vst [vmem:[%s5786_s29] sm:$0xff] %v4781_v56  ;;  %v4784_v46 = vmax.f32 %v4772_v43, 0.0  ;;  %v5403_v36 = vadd.f32 %v4603_v34, %v3588_v0  ;;  %v4605_v47 = vpop.f32.mrb[13].mxu1 }
 0x619   : > { %4794 = vst [vmem:[%s5786_s29 + $0x8] sm:$0xff] %v4782_v44  ;;  %v4785_v48 = vmax.f32 %v4773_v45, 0.0  ;;  %v5404_v11 = vadd.f32 %v4605_v47, %v3590_v57  ;;  %v4607_v49 = vpop.f32.mrb[14].mxu1 }
 0x61a   : > { %4796 = vst [vmem:[%s5786_s29 + $0x18] sm:$0xff] %v4784_v46  ;;  %v4739_v12 = vmul.f32 %v5403_v36, %v4726_v26  ;;  %v5405_v51 = vadd.f32 %v4607_v49, %v3592_v22  ;;  %v4609_v52 = vpop.f32.mrb[15].mxu1 }
 0x61b   : > { %4797 = vst [vmem:[%s5786_s29 + $0x20] sm:$0xff] %v4785_v48  ;;  %v4740_v13 = vmul.f32 %v5404_v11, %v4726_v26  ;;  %v5406_v55 = vadd.f32 %v4609_v52, %v3594_v28 }
 0x61c   : > { %v4775_v58 = vadd.f32 %v4762_v54, %v4739_v12  ;;  %v4742_v59 = vmul.f32 %v5405_v51, %v4731_v1 }
 0x61d   : > { %v4776_v61 = vadd.f32 %v4762_v54, %v4740_v13  ;;  %v4743_v17 = vmul.f32 %v5406_v55, %v4731_v1 }
 0x61e   : > { %v4787_v4 = vmax.f32 %v4775_v58, 0.0  ;;  %v4778_v23 = vadd.f32 %v4767_v60, %v4742_v59 }
 0x61f   : > { %v4788_v5 = vmax.f32 %v4776_v61, 0.0  ;;  %v4779_v8 = vadd.f32 %v4767_v60, %v4743_v17  ;;  %v5393_v9 = vpop.f32.mrb[4].mxu1 }
 0x620   : > { %4799 = vst [vmem:[%s5786_s29 + $0x30] sm:$0xff] %v4787_v4  ;;  %v4790_v24 = vmax.f32 %v4778_v23, 0.0  ;;  %v4741_v10 = vmul.f32 %v5393_v9, %v4726_v26  ;;  %v4646_v14 = vpop.f32.mrb[5].mxu1 }
 0x621   : > { %4800 = vst [vmem:[%s5786_s29 + $0x38] sm:$0xff] %v4788_v5  ;;  %v4791_v15 = vmax.f32 %v4779_v8, 0.0  ;;  %v4735_v27 = vmul.f32 %v4716_v53, %v4646_v14  ;;  %v5394_v16 = vpop.f32.mrb[6].mxu1 }
 0x622   : > { %4802 = vst [vmem:[%s5786_s29 + $0x48] sm:$0xff] %v4790_v24  ;;  %v4777_v18 = vadd.f32 %v4762_v54, %v4741_v10  ;;  %v4744_v19 = vmul.f32 %v5394_v16, %v4731_v1  ;;  %v4649_v2 = vpop.f32.mrb[7].mxu1 }
 0x623   : > { %4803 = vst [vmem:[%s5786_s29 + $0x50] sm:$0xff] %v4791_v15  ;;  %v4771_v20 = vadd.f32 %v4752_v38, %v4735_v27  ;;  %v4738_v21 = vmul.f32 %v6727_v62, %v4649_v2 }
 0x624   : > { %v4789_v50 = vmax.f32 %v4777_v18, 0.0  ;;  %v4780_v3 = vadd.f32 %v4767_v60, %v4744_v19 }
 0x625   : > { %v4783_v0 = vmax.f32 %v4771_v20, 0.0  ;;  %v4774_v57 = vadd.f32 %v4757_v6, %v4738_v21 }
 0x626   : > { %4801 = vst [vmem:[%s5786_s29 + $0x40] sm:$0xff] %v4789_v50  ;;  %v4792_v22 = vmax.f32 %v4780_v3, 0.0 }
 0x627   : > { %4795 = vst [vmem:[%s5786_s29 + $0x10] sm:$0xff] %v4783_v0  ;;  %v4786_v26 = vmax.f32 %v4774_v57, 0.0 }
 0x628   : > { %4804 = vst [vmem:[%s5786_s29 + $0x58] sm:$0xff] %v4792_v22 }
 0x629   : > { %4798 = vst [vmem:[%s5786_s29 + $0x28] sm:$0xff] %v4786_v26 }
 0x62a PF: > { %s26_s18 = sadd.s32 1, %s5681_s18  }
 0x62b   : > { %p23_p11 = scmp.ge.s32.totalorder %s26_s18, 4  }
 0x62d   :  { %25 = sbr.rel (!%p23_p11) target bundleno = 16 (0x10), region = 122 }

</bundles_post_ra>
